<compile_context>
chip_gen: v6e
topology: v6e:2x2x1
jax: 0.10.0
libtpu: 0.0.40
codegen_flags: <defaults>
</compile_context>

<pallas_src>
import functools

import jax
import jax.numpy as jnp
from jax.experimental import pallas as pl
from jax.experimental.pallas import tpu as pltpu


_VMEM = pl.BlockSpec(memory_space=pltpu.MemorySpace.VMEM)


# ---------------------------------------------------------------------------
# Fused decoder kernel: L-layer LSTM over a masked padded batch + vocab Linear
# ---------------------------------------------------------------------------
def _decoder_kernel(x_ref, mask_ref, h0_ref, c0_ref, *rest,
                    seq_len, hidden, num_layers, batch):
    """Fused decoder forward.

    x_ref:    (T*B, E)   f32  embedded input, time-major rows (row = t*B + b)
    mask_ref: (T*B, H)   f32  1.0 where t < lengths[b], else 0.0 (pre-broadcast)
    h0_ref:   (L, B, H)  f32  initial hidden states
    c0_ref:   (L, B, H)  f32  initial cell states
    rest: per-layer (W_ih^T (Din,4H), W_hh^T (H,4H), b_ih+b_hh (1,4H)) * L,
          lin_w^T (H,V), lin_b (1,V),
          outputs: logits (T*B,V), h_n (L,B,H), c_n (L,B,H),
          scratch:  seq_sc (T*B, H) VMEM (inter-layer hidden sequence)
    """
    n_w = 3 * num_layers
    layer_refs = rest[:n_w]
    lin_w_ref = rest[n_w]
    lin_b_ref = rest[n_w + 1]
    logits_ref = rest[n_w + 2]
    hn_ref = rest[n_w + 3]
    cn_ref = rest[n_w + 4]
    seq_sc = rest[n_w + 5]

    T, B, H = seq_len, batch, hidden
    mask = mask_ref[...] > 0.5                     # hoisted once: (T*B, H) bool
    zero_h = jnp.zeros((B, H), jnp.float32)

    layer_in = x_ref[...]                          # (T*B, Din) time-major
    for l in range(num_layers):
        wih = layer_refs[3 * l][...]               # (Din, 4H)
        whh = layer_refs[3 * l + 1][...]           # (H, 4H)
        bias = layer_refs[3 * l + 2][...]          # (1, 4H)

        # Hoisted input projection: one batched MXU pass over all timesteps.
        gx = jnp.dot(layer_in, wih, preferred_element_type=jnp.float32) + bias

        # Loop-carried recurrent state (values, not scratch RMW).
        h = h0_ref[l]                              # (B, H)
        c = c0_ref[l]                              # (B, H)

        # T is small & static -> unrolled; only h @ W_hh stays on the serial chain.
        for t in range(T):
            r0 = t * B
            g = gx[r0:r0 + B, :] + jnp.dot(h, whh,
                                           preferred_element_type=jnp.float32)
            sg = jax.nn.sigmoid(g)                 # one full-width (B, 4H) pass
            tg = jnp.tanh(g[:, 2 * H:3 * H])
            c_new = sg[:, H:2 * H] * c + sg[:, 0:H] * tg
            h_new = sg[:, 3 * H:4 * H] * jnp.tanh(c_new)

            m = mask[r0:r0 + B, :]                 # (B, H) bool, hoisted compare
            c = jnp.where(m, c_new, c)
            h = jnp.where(m, h_new, h)
            # pad_packed_sequence: padded positions are zero in the output seq.
            seq_sc[pl.ds(r0, B), :] = jnp.where(m, h_new, zero_h)

        hn_ref[l] = h
        cn_ref[l] = c
        layer_in = seq_sc[...]                     # inter-layer seq stays in VMEM
        # TODO(synk): nn.LSTM inter-layer dropout omitted (eval-mode no-op).

    # Fused epilogue: vocab projection over all T*B rows in one matmul.
    logits_ref[...] = (jnp.dot(layer_in, lin_w_ref[...],
                               preferred_element_type=jnp.float32)
                       + lin_b_ref[...])


def _decoder_core(x2d, mask2d, h0, c0, layer_weights, lin_w_t, lin_b_row):
    TB = x2d.shape[0]
    L, B, H = h0.shape
    T = TB // B
    V = lin_w_t.shape[1]

    inputs = [x2d, mask2d, h0, c0]
    for (wih_t, whh_t, bias) in layer_weights:
        inputs += [wih_t, whh_t, bias]
    inputs += [lin_w_t, lin_b_row]

    kernel = functools.partial(_decoder_kernel, seq_len=T, hidden=H,
                               num_layers=L, batch=B)
    # TODO(synk): for large B/T/H add a parallel batch grid + BlockSpec tiling
    # (and vmem_limit_bytes); at these shapes everything fits VMEM comfortably.
    return pl.pallas_call(
        kernel,
        out_shape=(jax.ShapeDtypeStruct((TB, V), jnp.float32),
                   jax.ShapeDtypeStruct((L, B, H), jnp.float32),
                   jax.ShapeDtypeStruct((L, B, H), jnp.float32)),
        in_specs=[_VMEM] * len(inputs),
        out_specs=(_VMEM, _VMEM, _VMEM),
        scratch_shapes=[pltpu.VMEM((TB, H), jnp.float32)],
    )(*inputs)


# ---------------------------------------------------------------------------
# Glue: Decoder.forward(x, lengths, states, is_latent_states)
# ---------------------------------------------------------------------------
def decoder_forward(params, x_tokens, lengths, states, is_latent_states=False):
    """Returns (logits (B,T,V), lengths, (h_n, c_n)) like the PyTorch Decoder."""
    B, T = x_tokens.shape
    L = len(params["lstm"])
    H = params["lstm"][0]["w_hh"].shape[1]
    V = params["lin_w"].shape[0]

    if is_latent_states:
        # latent2hidden: a (B, latent) x (latent, H) matmul is far below
        # kernel-launch cost -> leave it to XLA glue.
        c0_single = states @ jnp.transpose(params["l2h_w"]) + params["l2h_b"]
        c0 = jnp.broadcast_to(c0_single[None, :, :], (L, B, H))
        h0 = jnp.zeros_like(c0)
    else:
        h0, c0 = states
    h0 = h0.astype(jnp.float32)
    c0 = c0.astype(jnp.float32)

    # Embedding lookup (pure gather — glue).
    x = jnp.take(params["embedding"], x_tokens, axis=0).astype(jnp.float32)  # (B,T,E)
    # Time-major 2D layout: row r = t*B + b (keeps all in-kernel matmuls plain 2D).
    x2d = jnp.transpose(x, (1, 0, 2)).reshape(T * B, -1)

    # pack_padded_sequence semantics -> hoisted validity mask, pre-broadcast to H lanes.
    t_ids = jnp.arange(T, dtype=jnp.int32)
    mask_tb = lengths.astype(jnp.int32)[None, :] > t_ids[:, None]            # (T,B)
    mask2d = jnp.broadcast_to(mask_tb[:, :, None],
                              (T, B, H)).reshape(T * B, H).astype(jnp.float32)

    layer_weights = []
    for layer in params["lstm"]:
        layer_weights.append((jnp.transpose(layer["w_ih"]),                  # (Din,4H)
                              jnp.transpose(layer["w_hh"]),                  # (H,4H)
                              (layer["b_ih"] + layer["b_hh"]).reshape(1, 4 * H)))

    logits2d, h_n, c_n = _decoder_core(
        x2d, mask2d, h0, c0, layer_weights,
        jnp.transpose(params["lin_w"]), params["lin_b"].reshape(1, V))

    logits = logits2d.reshape(T, B, V).transpose(1, 0, 2)                    # (B,T,V)
    return logits, lengths, (h_n, c_n)


# ---------------------------------------------------------------------------
# Deterministic parameter construction (PyTorch-style uniform init ranges)
# ---------------------------------------------------------------------------
def make_params(key, vocab_size, emb_dim, hidden_size, num_layers, latent_size):
    keys = iter(jax.random.split(key, 6 + 4 * num_layers))
    params = {}
    params["embedding"] = jax.random.normal(next(keys), (vocab_size, emb_dim),
                                            jnp.float32)

    kl2h = 1.0 / float(latent_size) ** 0.5
    params["l2h_w"] = jax.random.uniform(next(keys), (hidden_size, latent_size),
                                         jnp.float32, -kl2h, kl2h)
    params["l2h_b"] = jax.random.uniform(next(keys), (hidden_size,),
                                         jnp.float32, -kl2h, kl2h)

    k = 1.0 / float(hidden_size) ** 0.5
    lstm_layers = []
    in_dim = emb_dim
    for _ in range(num_layers):
        layer = {
            "w_ih": jax.random.uniform(next(keys), (4 * hidden_size, in_dim),
                                       jnp.float32, -k, k),
            "w_hh": jax.random.uniform(next(keys), (4 * hidden_size, hidden_size),
                                       jnp.float32, -k, k),
            "b_ih": jax.random.uniform(next(keys), (4 * hidden_size,),
                                       jnp.float32, -k, k),
            "b_hh": jax.random.uniform(next(keys), (4 * hidden_size,),
                                       jnp.float32, -k, k),
        }
        lstm_layers.append(layer)
        in_dim = hidden_size
    params["lstm"] = lstm_layers

    ko = 1.0 / float(hidden_size) ** 0.5
    params["lin_w"] = jax.random.uniform(next(keys), (vocab_size, hidden_size),
                                         jnp.float32, -ko, ko)
    params["lin_b"] = jax.random.uniform(next(keys), (vocab_size,),
                                         jnp.float32, -ko, ko)
    return params


if __name__ == "__main__":
    # Small synthetic config consistent with the module:
    # Embedding(vocab=20, dim=8), LSTM(hidden=32, layers=2, dropout=0.0,
    # batch_first=True), latent2hidden: Linear(16 -> 32), output Linear(32 -> 20).
    VOCAB, EMB, HID, LAYERS, LATENT = 20, 8, 32, 2, 16
    B, T = 2, 8

    key = jax.random.PRNGKey(0)
    pkey, xkey, zkey = jax.random.split(key, 3)
    params = make_params(pkey, VOCAB, EMB, HID, LAYERS, LATENT)

    x_tokens = jax.random.randint(xkey, (B, T), 0, VOCAB, dtype=jnp.int32)
    lengths = jnp.array([8, 5], dtype=jnp.int32)   # sorted descending (enforce_sorted)
    latent_states = jax.random.normal(zkey, (B, LATENT), jnp.float32)

    logits, out_lengths, (h_n, c_n) = decoder_forward(
        params, x_tokens, lengths, latent_states, is_latent_states=True)
    jax.block_until_ready(logits)

    assert logits.shape == (B, T, VOCAB) and logits.dtype == jnp.float32
    assert h_n.shape == (LAYERS, B, HID) and c_n.shape == (LAYERS, B, HID)
    assert out_lengths.shape == (B,)
    print("KERNEL_OK")
</pallas_src>

<mosaic_0001>
module attributes {stable_mosaic.version = 11 : i64} {
  func.func @_decoder_kernel(%arg0: memref<16x8xf32, #tpu.memory_space<vmem>>, %arg1: memref<16x32xf32, #tpu.memory_space<vmem>>, %arg2: memref<2x2x32xf32, #tpu.memory_space<vmem>>, %arg3: memref<2x2x32xf32, #tpu.memory_space<vmem>>, %arg4: memref<8x128xf32, #tpu.memory_space<vmem>>, %arg5: memref<32x128xf32, #tpu.memory_space<vmem>>, %arg6: memref<1x128xf32, #tpu.memory_space<vmem>>, %arg7: memref<32x128xf32, #tpu.memory_space<vmem>>, %arg8: memref<32x128xf32, #tpu.memory_space<vmem>>, %arg9: memref<1x128xf32, #tpu.memory_space<vmem>>, %arg10: memref<32x20xf32, #tpu.memory_space<vmem>>, %arg11: memref<1x20xf32, #tpu.memory_space<vmem>>, %arg12: memref<16x20xf32, #tpu.memory_space<vmem>>, %arg13: memref<2x2x32xf32, #tpu.memory_space<vmem>>, %arg14: memref<2x2x32xf32, #tpu.memory_space<vmem>>, %arg15: memref<16x32xf32, #tpu.memory_space<vmem>>) attributes {dimension_semantics = [], scalar_prefetch = 0 : i64, scratch_operands = 1 : i64, tpu.core_type = #tpu.core_type<tc>} {
    %c0 = arith.constant 0 : index
    %c0_0 = arith.constant 0 : index
    %0 = vector.load %arg1[%c0, %c0_0] : memref<16x32xf32, #tpu.memory_space<vmem>>, vector<16x32xf32>
    %cst = arith.constant 5.000000e-01 : f32
    %1 = vector.broadcast %cst : f32 to vector<16x32xf32>
    %2 = arith.cmpf ogt, %0, %1 : vector<16x32xf32>
    %cst_1 = arith.constant 0.000000e+00 : f32
    %3 = vector.broadcast %cst_1 : f32 to vector<2x32xf32>
    %c0_2 = arith.constant 0 : index
    %c0_3 = arith.constant 0 : index
    %4 = vector.load %arg0[%c0_2, %c0_3] : memref<16x8xf32, #tpu.memory_space<vmem>>, vector<16x8xf32>
    %c0_4 = arith.constant 0 : index
    %c0_5 = arith.constant 0 : index
    %5 = vector.load %arg4[%c0_4, %c0_5] : memref<8x128xf32, #tpu.memory_space<vmem>>, vector<8x128xf32>
    %c0_6 = arith.constant 0 : index
    %c0_7 = arith.constant 0 : index
    %6 = vector.load %arg5[%c0_6, %c0_7] : memref<32x128xf32, #tpu.memory_space<vmem>>, vector<32x128xf32>
    %c0_8 = arith.constant 0 : index
    %c0_9 = arith.constant 0 : index
    %7 = vector.load %arg6[%c0_8, %c0_9] : memref<1x128xf32, #tpu.memory_space<vmem>>, vector<1x128xf32>
    %cst_10 = arith.constant dense<0.000000e+00> : vector<16x128xf32>
    %8 = tpu.matmul %4, %5, %cst_10 {dimension_numbers = #tpu.dot_dimension_numbers<[1], [0], [0], [1], [0, 0, 1, 1], [], []>} : vector<16x8xf32>, vector<8x128xf32>, vector<16x128xf32> -> vector<16x128xf32>
    %9 = vector.broadcast %7 : vector<1x128xf32> to vector<16x128xf32>
    %10 = arith.addf %8, %9 : vector<16x128xf32>
    %c0_11 = arith.constant 0 : index
    %c0_12 = arith.constant 0 : index
    %c0_13 = arith.constant 0 : index
    %11 = vector.load %arg2[%c0_11, %c0_12, %c0_13] : memref<2x2x32xf32, #tpu.memory_space<vmem>>, vector<1x2x32xf32>
    %12 = vector.shape_cast %11 : vector<1x2x32xf32> to vector<2x32xf32>
    %c0_14 = arith.constant 0 : index
    %c0_15 = arith.constant 0 : index
    %c0_16 = arith.constant 0 : index
    %13 = vector.load %arg3[%c0_14, %c0_15, %c0_16] : memref<2x2x32xf32, #tpu.memory_space<vmem>>, vector<1x2x32xf32>
    %14 = vector.shape_cast %13 : vector<1x2x32xf32> to vector<2x32xf32>
    %15 = vector.extract_strided_slice %10 {offsets = [0, 0], sizes = [2, 128], strides = [1, 1]} : vector<16x128xf32> to vector<2x128xf32>
    %cst_17 = arith.constant dense<0.000000e+00> : vector<2x128xf32>
    %16 = tpu.matmul %12, %6, %cst_17 {dimension_numbers = #tpu.dot_dimension_numbers<[1], [0], [0], [1], [0, 0, 1, 1], [], []>} : vector<2x32xf32>, vector<32x128xf32>, vector<2x128xf32> -> vector<2x128xf32>
    %17 = arith.addf %15, %16 : vector<2x128xf32>
    %18 = arith.negf %17 : vector<2x128xf32>
    %19 = math.exp %18 : vector<2x128xf32>
    %cst_18 = arith.constant 1.000000e+00 : f32
    %20 = vector.broadcast %cst_18 : f32 to vector<2x128xf32>
    %21 = arith.addf %20, %19 : vector<2x128xf32>
    %22 = arith.divf %20, %21 : vector<2x128xf32>
    %23 = vector.extract_strided_slice %17 {offsets = [0, 64], sizes = [2, 32], strides = [1, 1]} : vector<2x128xf32> to vector<2x32xf32>
    %24 = math.tanh %23 : vector<2x32xf32>
    %25 = vector.extract_strided_slice %22 {offsets = [0, 32], sizes = [2, 32], strides = [1, 1]} : vector<2x128xf32> to vector<2x32xf32>
    %26 = arith.mulf %25, %14 : vector<2x32xf32>
    %27 = vector.extract_strided_slice %22 {offsets = [0, 0], sizes = [2, 32], strides = [1, 1]} : vector<2x128xf32> to vector<2x32xf32>
    %28 = arith.mulf %27, %24 : vector<2x32xf32>
    %29 = arith.addf %26, %28 : vector<2x32xf32>
    %30 = vector.extract_strided_slice %22 {offsets = [0, 96], sizes = [2, 32], strides = [1, 1]} : vector<2x128xf32> to vector<2x32xf32>
    %31 = math.tanh %29 : vector<2x32xf32>
    %32 = arith.mulf %30, %31 : vector<2x32xf32>
    %33 = vector.extract_strided_slice %2 {offsets = [0, 0], sizes = [2, 32], strides = [1, 1]} : vector<16x32xi1> to vector<2x32xi1>
    %34 = arith.select %33, %29, %14 : vector<2x32xi1>, vector<2x32xf32>
    %35 = arith.select %33, %32, %12 : vector<2x32xi1>, vector<2x32xf32>
    %36 = arith.select %33, %32, %3 : vector<2x32xi1>, vector<2x32xf32>
    %c0_19 = arith.constant 0 : index
    %c0_20 = arith.constant 0 : index
    %37 = vector.load %arg15[%c0_19, %c0_20] : memref<16x32xf32, #tpu.memory_space<vmem>>, vector<2x32xf32>
    tpu.vector_store %arg15[%c0_19, %c0_20], %36 {strides = array<i32>} : memref<16x32xf32, #tpu.memory_space<vmem>>, vector<2x32xf32>,
    %38 = vector.extract_strided_slice %10 {offsets = [2, 0], sizes = [2, 128], strides = [1, 1]} : vector<16x128xf32> to vector<2x128xf32>
    %cst_21 = arith.constant dense<0.000000e+00> : vector<2x128xf32>
    %39 = tpu.matmul %35, %6, %cst_21 {dimension_numbers = #tpu.dot_dimension_numbers<[1], [0], [0], [1], [0, 0, 1, 1], [], []>} : vector<2x32xf32>, vector<32x128xf32>, vector<2x128xf32> -> vector<2x128xf32>
    %40 = arith.addf %38, %39 : vector<2x128xf32>
    %41 = arith.negf %40 : vector<2x128xf32>
    %42 = math.exp %41 : vector<2x128xf32>
    %cst_22 = arith.constant 1.000000e+00 : f32
    %43 = vector.broadcast %cst_22 : f32 to vector<2x128xf32>
    %44 = arith.addf %43, %42 : vector<2x128xf32>
    %45 = arith.divf %43, %44 : vector<2x128xf32>
    %46 = vector.extract_strided_slice %40 {offsets = [0, 64], sizes = [2, 32], strides = [1, 1]} : vector<2x128xf32> to vector<2x32xf32>
    %47 = math.tanh %46 : vector<2x32xf32>
    %48 = vector.extract_strided_slice %45 {offsets = [0, 32], sizes = [2, 32], strides = [1, 1]} : vector<2x128xf32> to vector<2x32xf32>
    %49 = arith.mulf %48, %34 : vector<2x32xf32>
    %50 = vector.extract_strided_slice %45 {offsets = [0, 0], sizes = [2, 32], strides = [1, 1]} : vector<2x128xf32> to vector<2x32xf32>
    %51 = arith.mulf %50, %47 : vector<2x32xf32>
    %52 = arith.addf %49, %51 : vector<2x32xf32>
    %53 = vector.extract_strided_slice %45 {offsets = [0, 96], sizes = [2, 32], strides = [1, 1]} : vector<2x128xf32> to vector<2x32xf32>
    %54 = math.tanh %52 : vector<2x32xf32>
    %55 = arith.mulf %53, %54 : vector<2x32xf32>
    %56 = vector.extract_strided_slice %2 {offsets = [2, 0], sizes = [2, 32], strides = [1, 1]} : vector<16x32xi1> to vector<2x32xi1>
    %57 = arith.select %56, %52, %34 : vector<2x32xi1>, vector<2x32xf32>
    %58 = arith.select %56, %55, %35 : vector<2x32xi1>, vector<2x32xf32>
    %59 = arith.select %56, %55, %3 : vector<2x32xi1>, vector<2x32xf32>
    %c2 = arith.constant 2 : index
    %c0_23 = arith.constant 0 : index
    %60 = vector.load %arg15[%c2, %c0_23] : memref<16x32xf32, #tpu.memory_space<vmem>>, vector<2x32xf32>
    tpu.vector_store %arg15[%c2, %c0_23], %59 {strides = array<i32>} : memref<16x32xf32, #tpu.memory_space<vmem>>, vector<2x32xf32>,
    %61 = vector.extract_strided_slice %10 {offsets = [4, 0], sizes = [2, 128], strides = [1, 1]} : vector<16x128xf32> to vector<2x128xf32>
    %cst_24 = arith.constant dense<0.000000e+00> : vector<2x128xf32>
    %62 = tpu.matmul %58, %6, %cst_24 {dimension_numbers = #tpu.dot_dimension_numbers<[1], [0], [0], [1], [0, 0, 1, 1], [], []>} : vector<2x32xf32>, vector<32x128xf32>, vector<2x128xf32> -> vector<2x128xf32>
    %63 = arith.addf %61, %62 : vector<2x128xf32>
    %64 = arith.negf %63 : vector<2x128xf32>
    %65 = math.exp %64 : vector<2x128xf32>
    %cst_25 = arith.constant 1.000000e+00 : f32
    %66 = vector.broadcast %cst_25 : f32 to vector<2x128xf32>
    %67 = arith.addf %66, %65 : vector<2x128xf32>
    %68 = arith.divf %66, %67 : vector<2x128xf32>
    %69 = vector.extract_strided_slice %63 {offsets = [0, 64], sizes = [2, 32], strides = [1, 1]} : vector<2x128xf32> to vector<2x32xf32>
    %70 = math.tanh %69 : vector<2x32xf32>
    %71 = vector.extract_strided_slice %68 {offsets = [0, 32], sizes = [2, 32], strides = [1, 1]} : vector<2x128xf32> to vector<2x32xf32>
    %72 = arith.mulf %71, %57 : vector<2x32xf32>
    %73 = vector.extract_strided_slice %68 {offsets = [0, 0], sizes = [2, 32], strides = [1, 1]} : vector<2x128xf32> to vector<2x32xf32>
    %74 = arith.mulf %73, %70 : vector<2x32xf32>
    %75 = arith.addf %72, %74 : vector<2x32xf32>
    %76 = vector.extract_strided_slice %68 {offsets = [0, 96], sizes = [2, 32], strides = [1, 1]} : vector<2x128xf32> to vector<2x32xf32>
    %77 = math.tanh %75 : vector<2x32xf32>
    %78 = arith.mulf %76, %77 : vector<2x32xf32>
    %79 = vector.extract_strided_slice %2 {offsets = [4, 0], sizes = [2, 32], strides = [1, 1]} : vector<16x32xi1> to vector<2x32xi1>
    %80 = arith.select %79, %75, %57 : vector<2x32xi1>, vector<2x32xf32>
    %81 = arith.select %79, %78, %58 : vector<2x32xi1>, vector<2x32xf32>
    %82 = arith.select %79, %78, %3 : vector<2x32xi1>, vector<2x32xf32>
    %c4 = arith.constant 4 : index
    %c0_26 = arith.constant 0 : index
    %83 = vector.load %arg15[%c4, %c0_26] : memref<16x32xf32, #tpu.memory_space<vmem>>, vector<2x32xf32>
    tpu.vector_store %arg15[%c4, %c0_26], %82 {strides = array<i32>} : memref<16x32xf32, #tpu.memory_space<vmem>>, vector<2x32xf32>,
    %84 = vector.extract_strided_slice %10 {offsets = [6, 0], sizes = [2, 128], strides = [1, 1]} : vector<16x128xf32> to vector<2x128xf32>
    %cst_27 = arith.constant dense<0.000000e+00> : vector<2x128xf32>
    %85 = tpu.matmul %81, %6, %cst_27 {dimension_numbers = #tpu.dot_dimension_numbers<[1], [0], [0], [1], [0, 0, 1, 1], [], []>} : vector<2x32xf32>, vector<32x128xf32>, vector<2x128xf32> -> vector<2x128xf32>
    %86 = arith.addf %84, %85 : vector<2x128xf32>
    %87 = arith.negf %86 : vector<2x128xf32>
    %88 = math.exp %87 : vector<2x128xf32>
    %cst_28 = arith.constant 1.000000e+00 : f32
    %89 = vector.broadcast %cst_28 : f32 to vector<2x128xf32>
    %90 = arith.addf %89, %88 : vector<2x128xf32>
    %91 = arith.divf %89, %90 : vector<2x128xf32>
    %92 = vector.extract_strided_slice %86 {offsets = [0, 64], sizes = [2, 32], strides = [1, 1]} : vector<2x128xf32> to vector<2x32xf32>
    %93 = math.tanh %92 : vector<2x32xf32>
    %94 = vector.extract_strided_slice %91 {offsets = [0, 32], sizes = [2, 32], strides = [1, 1]} : vector<2x128xf32> to vector<2x32xf32>
    %95 = arith.mulf %94, %80 : vector<2x32xf32>
    %96 = vector.extract_strided_slice %91 {offsets = [0, 0], sizes = [2, 32], strides = [1, 1]} : vector<2x128xf32> to vector<2x32xf32>
    %97 = arith.mulf %96, %93 : vector<2x32xf32>
    %98 = arith.addf %95, %97 : vector<2x32xf32>
    %99 = vector.extract_strided_slice %91 {offsets = [0, 96], sizes = [2, 32], strides = [1, 1]} : vector<2x128xf32> to vector<2x32xf32>
    %100 = math.tanh %98 : vector<2x32xf32>
    %101 = arith.mulf %99, %100 : vector<2x32xf32>
    %102 = vector.extract_strided_slice %2 {offsets = [6, 0], sizes = [2, 32], strides = [1, 1]} : vector<16x32xi1> to vector<2x32xi1>
    %103 = arith.select %102, %98, %80 : vector<2x32xi1>, vector<2x32xf32>
    %104 = arith.select %102, %101, %81 : vector<2x32xi1>, vector<2x32xf32>
    %105 = arith.select %102, %101, %3 : vector<2x32xi1>, vector<2x32xf32>
    %c6 = arith.constant 6 : index
    %c0_29 = arith.constant 0 : index
    %106 = vector.load %arg15[%c6, %c0_29] : memref<16x32xf32, #tpu.memory_space<vmem>>, vector<2x32xf32>
    tpu.vector_store %arg15[%c6, %c0_29], %105 {strides = array<i32>} : memref<16x32xf32, #tpu.memory_space<vmem>>, vector<2x32xf32>,
    %107 = vector.extract_strided_slice %10 {offsets = [8, 0], sizes = [2, 128], strides = [1, 1]} : vector<16x128xf32> to vector<2x128xf32>
    %cst_30 = arith.constant dense<0.000000e+00> : vector<2x128xf32>
    %108 = tpu.matmul %104, %6, %cst_30 {dimension_numbers = #tpu.dot_dimension_numbers<[1], [0], [0], [1], [0, 0, 1, 1], [], []>} : vector<2x32xf32>, vector<32x128xf32>, vector<2x128xf32> -> vector<2x128xf32>
    %109 = arith.addf %107, %108 : vector<2x128xf32>
    %110 = arith.negf %109 : vector<2x128xf32>
    %111 = math.exp %110 : vector<2x128xf32>
    %cst_31 = arith.constant 1.000000e+00 : f32
    %112 = vector.broadcast %cst_31 : f32 to vector<2x128xf32>
    %113 = arith.addf %112, %111 : vector<2x128xf32>
    %114 = arith.divf %112, %113 : vector<2x128xf32>
    %115 = vector.extract_strided_slice %109 {offsets = [0, 64], sizes = [2, 32], strides = [1, 1]} : vector<2x128xf32> to vector<2x32xf32>
    %116 = math.tanh %115 : vector<2x32xf32>
    %117 = vector.extract_strided_slice %114 {offsets = [0, 32], sizes = [2, 32], strides = [1, 1]} : vector<2x128xf32> to vector<2x32xf32>
    %118 = arith.mulf %117, %103 : vector<2x32xf32>
    %119 = vector.extract_strided_slice %114 {offsets = [0, 0], sizes = [2, 32], strides = [1, 1]} : vector<2x128xf32> to vector<2x32xf32>
    %120 = arith.mulf %119, %116 : vector<2x32xf32>
    %121 = arith.addf %118, %120 : vector<2x32xf32>
    %122 = vector.extract_strided_slice %114 {offsets = [0, 96], sizes = [2, 32], strides = [1, 1]} : vector<2x128xf32> to vector<2x32xf32>
    %123 = math.tanh %121 : vector<2x32xf32>
    %124 = arith.mulf %122, %123 : vector<2x32xf32>
    %125 = vector.extract_strided_slice %2 {offsets = [8, 0], sizes = [2, 32], strides = [1, 1]} : vector<16x32xi1> to vector<2x32xi1>
    %126 = arith.select %125, %121, %103 : vector<2x32xi1>, vector<2x32xf32>
    %127 = arith.select %125, %124, %104 : vector<2x32xi1>, vector<2x32xf32>
    %128 = arith.select %125, %124, %3 : vector<2x32xi1>, vector<2x32xf32>
    %c8 = arith.constant 8 : index
    %c0_32 = arith.constant 0 : index
    %129 = vector.load %arg15[%c8, %c0_32] : memref<16x32xf32, #tpu.memory_space<vmem>>, vector<2x32xf32>
    tpu.vector_store %arg15[%c8, %c0_32], %128 {strides = array<i32>} : memref<16x32xf32, #tpu.memory_space<vmem>>, vector<2x32xf32>,
    %130 = vector.extract_strided_slice %10 {offsets = [10, 0], sizes = [2, 128], strides = [1, 1]} : vector<16x128xf32> to vector<2x128xf32>
    %cst_33 = arith.constant dense<0.000000e+00> : vector<2x128xf32>
    %131 = tpu.matmul %127, %6, %cst_33 {dimension_numbers = #tpu.dot_dimension_numbers<[1], [0], [0], [1], [0, 0, 1, 1], [], []>} : vector<2x32xf32>, vector<32x128xf32>, vector<2x128xf32> -> vector<2x128xf32>
    %132 = arith.addf %130, %131 : vector<2x128xf32>
    %133 = arith.negf %132 : vector<2x128xf32>
    %134 = math.exp %133 : vector<2x128xf32>
    %cst_34 = arith.constant 1.000000e+00 : f32
    %135 = vector.broadcast %cst_34 : f32 to vector<2x128xf32>
    %136 = arith.addf %135, %134 : vector<2x128xf32>
    %137 = arith.divf %135, %136 : vector<2x128xf32>
    %138 = vector.extract_strided_slice %132 {offsets = [0, 64], sizes = [2, 32], strides = [1, 1]} : vector<2x128xf32> to vector<2x32xf32>
    %139 = math.tanh %138 : vector<2x32xf32>
    %140 = vector.extract_strided_slice %137 {offsets = [0, 32], sizes = [2, 32], strides = [1, 1]} : vector<2x128xf32> to vector<2x32xf32>
    %141 = arith.mulf %140, %126 : vector<2x32xf32>
    %142 = vector.extract_strided_slice %137 {offsets = [0, 0], sizes = [2, 32], strides = [1, 1]} : vector<2x128xf32> to vector<2x32xf32>
    %143 = arith.mulf %142, %139 : vector<2x32xf32>
    %144 = arith.addf %141, %143 : vector<2x32xf32>
    %145 = vector.extract_strided_slice %137 {offsets = [0, 96], sizes = [2, 32], strides = [1, 1]} : vector<2x128xf32> to vector<2x32xf32>
    %146 = math.tanh %144 : vector<2x32xf32>
    %147 = arith.mulf %145, %146 : vector<2x32xf32>
    %148 = vector.extract_strided_slice %2 {offsets = [10, 0], sizes = [2, 32], strides = [1, 1]} : vector<16x32xi1> to vector<2x32xi1>
    %149 = arith.select %148, %144, %126 : vector<2x32xi1>, vector<2x32xf32>
    %150 = arith.select %148, %147, %127 : vector<2x32xi1>, vector<2x32xf32>
    %151 = arith.select %148, %147, %3 : vector<2x32xi1>, vector<2x32xf32>
    %c10 = arith.constant 10 : index
    %c0_35 = arith.constant 0 : index
    %152 = vector.load %arg15[%c10, %c0_35] : memref<16x32xf32, #tpu.memory_space<vmem>>, vector<2x32xf32>
    tpu.vector_store %arg15[%c10, %c0_35], %151 {strides = array<i32>} : memref<16x32xf32, #tpu.memory_space<vmem>>, vector<2x32xf32>,
    %153 = vector.extract_strided_slice %10 {offsets = [12, 0], sizes = [2, 128], strides = [1, 1]} : vector<16x128xf32> to vector<2x128xf32>
    %cst_36 = arith.constant dense<0.000000e+00> : vector<2x128xf32>
    %154 = tpu.matmul %150, %6, %cst_36 {dimension_numbers = #tpu.dot_dimension_numbers<[1], [0], [0], [1], [0, 0, 1, 1], [], []>} : vector<2x32xf32>, vector<32x128xf32>, vector<2x128xf32> -> vector<2x128xf32>
    %155 = arith.addf %153, %154 : vector<2x128xf32>
    %156 = arith.negf %155 : vector<2x128xf32>
    %157 = math.exp %156 : vector<2x128xf32>
    %cst_37 = arith.constant 1.000000e+00 : f32
    %158 = vector.broadcast %cst_37 : f32 to vector<2x128xf32>
    %159 = arith.addf %158, %157 : vector<2x128xf32>
    %160 = arith.divf %158, %159 : vector<2x128xf32>
    %161 = vector.extract_strided_slice %155 {offsets = [0, 64], sizes = [2, 32], strides = [1, 1]} : vector<2x128xf32> to vector<2x32xf32>
    %162 = math.tanh %161 : vector<2x32xf32>
    %163 = vector.extract_strided_slice %160 {offsets = [0, 32], sizes = [2, 32], strides = [1, 1]} : vector<2x128xf32> to vector<2x32xf32>
    %164 = arith.mulf %163, %149 : vector<2x32xf32>
    %165 = vector.extract_strided_slice %160 {offsets = [0, 0], sizes = [2, 32], strides = [1, 1]} : vector<2x128xf32> to vector<2x32xf32>
    %166 = arith.mulf %165, %162 : vector<2x32xf32>
    %167 = arith.addf %164, %166 : vector<2x32xf32>
    %168 = vector.extract_strided_slice %160 {offsets = [0, 96], sizes = [2, 32], strides = [1, 1]} : vector<2x128xf32> to vector<2x32xf32>
    %169 = math.tanh %167 : vector<2x32xf32>
    %170 = arith.mulf %168, %169 : vector<2x32xf32>
    %171 = vector.extract_strided_slice %2 {offsets = [12, 0], sizes = [2, 32], strides = [1, 1]} : vector<16x32xi1> to vector<2x32xi1>
    %172 = arith.select %171, %167, %149 : vector<2x32xi1>, vector<2x32xf32>
    %173 = arith.select %171, %170, %150 : vector<2x32xi1>, vector<2x32xf32>
    %174 = arith.select %171, %170, %3 : vector<2x32xi1>, vector<2x32xf32>
    %c12 = arith.constant 12 : index
    %c0_38 = arith.constant 0 : index
    %175 = vector.load %arg15[%c12, %c0_38] : memref<16x32xf32, #tpu.memory_space<vmem>>, vector<2x32xf32>
    tpu.vector_store %arg15[%c12, %c0_38], %174 {strides = array<i32>} : memref<16x32xf32, #tpu.memory_space<vmem>>, vector<2x32xf32>,
    %176 = vector.extract_strided_slice %10 {offsets = [14, 0], sizes = [2, 128], strides = [1, 1]} : vector<16x128xf32> to vector<2x128xf32>
    %cst_39 = arith.constant dense<0.000000e+00> : vector<2x128xf32>
    %177 = tpu.matmul %173, %6, %cst_39 {dimension_numbers = #tpu.dot_dimension_numbers<[1], [0], [0], [1], [0, 0, 1, 1], [], []>} : vector<2x32xf32>, vector<32x128xf32>, vector<2x128xf32> -> vector<2x128xf32>
    %178 = arith.addf %176, %177 : vector<2x128xf32>
    %179 = arith.negf %178 : vector<2x128xf32>
    %180 = math.exp %179 : vector<2x128xf32>
    %cst_40 = arith.constant 1.000000e+00 : f32
    %181 = vector.broadcast %cst_40 : f32 to vector<2x128xf32>
    %182 = arith.addf %181, %180 : vector<2x128xf32>
    %183 = arith.divf %181, %182 : vector<2x128xf32>
    %184 = vector.extract_strided_slice %178 {offsets = [0, 64], sizes = [2, 32], strides = [1, 1]} : vector<2x128xf32> to vector<2x32xf32>
    %185 = math.tanh %184 : vector<2x32xf32>
    %186 = vector.extract_strided_slice %183 {offsets = [0, 32], sizes = [2, 32], strides = [1, 1]} : vector<2x128xf32> to vector<2x32xf32>
    %187 = arith.mulf %186, %172 : vector<2x32xf32>
    %188 = vector.extract_strided_slice %183 {offsets = [0, 0], sizes = [2, 32], strides = [1, 1]} : vector<2x128xf32> to vector<2x32xf32>
    %189 = arith.mulf %188, %185 : vector<2x32xf32>
    %190 = arith.addf %187, %189 : vector<2x32xf32>
    %191 = vector.extract_strided_slice %183 {offsets = [0, 96], sizes = [2, 32], strides = [1, 1]} : vector<2x128xf32> to vector<2x32xf32>
    %192 = math.tanh %190 : vector<2x32xf32>
    %193 = arith.mulf %191, %192 : vector<2x32xf32>
    %194 = vector.extract_strided_slice %2 {offsets = [14, 0], sizes = [2, 32], strides = [1, 1]} : vector<16x32xi1> to vector<2x32xi1>
    %195 = arith.select %194, %190, %172 : vector<2x32xi1>, vector<2x32xf32>
    %196 = arith.select %194, %193, %173 : vector<2x32xi1>, vector<2x32xf32>
    %197 = arith.select %194, %193, %3 : vector<2x32xi1>, vector<2x32xf32>
    %c14 = arith.constant 14 : index
    %c0_41 = arith.constant 0 : index
    %198 = vector.load %arg15[%c14, %c0_41] : memref<16x32xf32, #tpu.memory_space<vmem>>, vector<2x32xf32>
    tpu.vector_store %arg15[%c14, %c0_41], %197 {strides = array<i32>} : memref<16x32xf32, #tpu.memory_space<vmem>>, vector<2x32xf32>,
    %c0_42 = arith.constant 0 : index
    %c0_43 = arith.constant 0 : index
    %c0_44 = arith.constant 0 : index
    %199 = vector.load %arg13[%c0_42, %c0_43, %c0_44] : memref<2x2x32xf32, #tpu.memory_space<vmem>>, vector<1x2x32xf32>
    %200 = vector.shape_cast %199 : vector<1x2x32xf32> to vector<2x32xf32>
    %201 = vector.shape_cast %196 : vector<2x32xf32> to vector<1x2x32xf32>
    tpu.vector_store %arg13[%c0_42, %c0_43, %c0_44], %201 {strides = array<i32>} : memref<2x2x32xf32, #tpu.memory_space<vmem>>, vector<1x2x32xf32>,
    %c0_45 = arith.constant 0 : index
    %c0_46 = arith.constant 0 : index
    %c0_47 = arith.constant 0 : index
    %202 = vector.load %arg14[%c0_45, %c0_46, %c0_47] : memref<2x2x32xf32, #tpu.memory_space<vmem>>, vector<1x2x32xf32>
    %203 = vector.shape_cast %202 : vector<1x2x32xf32> to vector<2x32xf32>
    %204 = vector.shape_cast %195 : vector<2x32xf32> to vector<1x2x32xf32>
    tpu.vector_store %arg14[%c0_45, %c0_46, %c0_47], %204 {strides = array<i32>} : memref<2x2x32xf32, #tpu.memory_space<vmem>>, vector<1x2x32xf32>,
    %c0_48 = arith.constant 0 : index
    %c0_49 = arith.constant 0 : index
    %205 = vector.load %arg15[%c0_48, %c0_49] : memref<16x32xf32, #tpu.memory_space<vmem>>, vector<16x32xf32>
    %c0_50 = arith.constant 0 : index
    %c0_51 = arith.constant 0 : index
    %206 = vector.load %arg7[%c0_50, %c0_51] : memref<32x128xf32, #tpu.memory_space<vmem>>, vector<32x128xf32>
    %c0_52 = arith.constant 0 : index
    %c0_53 = arith.constant 0 : index
    %207 = vector.load %arg8[%c0_52, %c0_53] : memref<32x128xf32, #tpu.memory_space<vmem>>, vector<32x128xf32>
    %c0_54 = arith.constant 0 : index
    %c0_55 = arith.constant 0 : index
    %208 = vector.load %arg9[%c0_54, %c0_55] : memref<1x128xf32, #tpu.memory_space<vmem>>, vector<1x128xf32>
    %cst_56 = arith.constant dense<0.000000e+00> : vector<16x128xf32>
    %209 = tpu.matmul %205, %206, %cst_56 {dimension_numbers = #tpu.dot_dimension_numbers<[1], [0], [0], [1], [0, 0, 1, 1], [], []>} : vector<16x32xf32>, vector<32x128xf32>, vector<16x128xf32> -> vector<16x128xf32>
    %210 = vector.broadcast %208 : vector<1x128xf32> to vector<16x128xf32>
    %211 = arith.addf %209, %210 : vector<16x128xf32>
    %c1 = arith.constant 1 : index
    %c0_57 = arith.constant 0 : index
    %c0_58 = arith.constant 0 : index
    %212 = vector.load %arg2[%c1, %c0_57, %c0_58] : memref<2x2x32xf32, #tpu.memory_space<vmem>>, vector<1x2x32xf32>
    %213 = vector.shape_cast %212 : vector<1x2x32xf32> to vector<2x32xf32>
    %c1_59 = arith.constant 1 : index
    %c0_60 = arith.constant 0 : index
    %c0_61 = arith.constant 0 : index
    %214 = vector.load %arg3[%c1_59, %c0_60, %c0_61] : memref<2x2x32xf32, #tpu.memory_space<vmem>>, vector<1x2x32xf32>
    %215 = vector.shape_cast %214 : vector<1x2x32xf32> to vector<2x32xf32>
    %216 = vector.extract_strided_slice %211 {offsets = [0, 0], sizes = [2, 128], strides = [1, 1]} : vector<16x128xf32> to vector<2x128xf32>
    %cst_62 = arith.constant dense<0.000000e+00> : vector<2x128xf32>
    %217 = tpu.matmul %213, %207, %cst_62 {dimension_numbers = #tpu.dot_dimension_numbers<[1], [0], [0], [1], [0, 0, 1, 1], [], []>} : vector<2x32xf32>, vector<32x128xf32>, vector<2x128xf32> -> vector<2x128xf32>
    %218 = arith.addf %216, %217 : vector<2x128xf32>
    %219 = arith.negf %218 : vector<2x128xf32>
    %220 = math.exp %219 : vector<2x128xf32>
    %cst_63 = arith.constant 1.000000e+00 : f32
    %221 = vector.broadcast %cst_63 : f32 to vector<2x128xf32>
    %222 = arith.addf %221, %220 : vector<2x128xf32>
    %223 = arith.divf %221, %222 : vector<2x128xf32>
    %224 = vector.extract_strided_slice %218 {offsets = [0, 64], sizes = [2, 32], strides = [1, 1]} : vector<2x128xf32> to vector<2x32xf32>
    %225 = math.tanh %224 : vector<2x32xf32>
    %226 = vector.extract_strided_slice %223 {offsets = [0, 32], sizes = [2, 32], strides = [1, 1]} : vector<2x128xf32> to vector<2x32xf32>
    %227 = arith.mulf %226, %215 : vector<2x32xf32>
    %228 = vector.extract_strided_slice %223 {offsets = [0, 0], sizes = [2, 32], strides = [1, 1]} : vector<2x128xf32> to vector<2x32xf32>
    %229 = arith.mulf %228, %225 : vector<2x32xf32>
    %230 = arith.addf %227, %229 : vector<2x32xf32>
    %231 = vector.extract_strided_slice %223 {offsets = [0, 96], sizes = [2, 32], strides = [1, 1]} : vector<2x128xf32> to vector<2x32xf32>
    %232 = math.tanh %230 : vector<2x32xf32>
    %233 = arith.mulf %231, %232 : vector<2x32xf32>
    %234 = vector.extract_strided_slice %2 {offsets = [0, 0], sizes = [2, 32], strides = [1, 1]} : vector<16x32xi1> to vector<2x32xi1>
    %235 = arith.select %234, %230, %215 : vector<2x32xi1>, vector<2x32xf32>
    %236 = arith.select %234, %233, %213 : vector<2x32xi1>, vector<2x32xf32>
    %237 = arith.select %234, %233, %3 : vector<2x32xi1>, vector<2x32xf32>
    %c0_64 = arith.constant 0 : index
    %c0_65 = arith.constant 0 : index
    %238 = vector.load %arg15[%c0_64, %c0_65] : memref<16x32xf32, #tpu.memory_space<vmem>>, vector<2x32xf32>
    tpu.vector_store %arg15[%c0_64, %c0_65], %237 {strides = array<i32>} : memref<16x32xf32, #tpu.memory_space<vmem>>, vector<2x32xf32>,
    %239 = vector.extract_strided_slice %211 {offsets = [2, 0], sizes = [2, 128], strides = [1, 1]} : vector<16x128xf32> to vector<2x128xf32>
    %cst_66 = arith.constant dense<0.000000e+00> : vector<2x128xf32>
    %240 = tpu.matmul %236, %207, %cst_66 {dimension_numbers = #tpu.dot_dimension_numbers<[1], [0], [0], [1], [0, 0, 1, 1], [], []>} : vector<2x32xf32>, vector<32x128xf32>, vector<2x128xf32> -> vector<2x128xf32>
    %241 = arith.addf %239, %240 : vector<2x128xf32>
    %242 = arith.negf %241 : vector<2x128xf32>
    %243 = math.exp %242 : vector<2x128xf32>
    %cst_67 = arith.constant 1.000000e+00 : f32
    %244 = vector.broadcast %cst_67 : f32 to vector<2x128xf32>
    %245 = arith.addf %244, %243 : vector<2x128xf32>
    %246 = arith.divf %244, %245 : vector<2x128xf32>
    %247 = vector.extract_strided_slice %241 {offsets = [0, 64], sizes = [2, 32], strides = [1, 1]} : vector<2x128xf32> to vector<2x32xf32>
    %248 = math.tanh %247 : vector<2x32xf32>
    %249 = vector.extract_strided_slice %246 {offsets = [0, 32], sizes = [2, 32], strides = [1, 1]} : vector<2x128xf32> to vector<2x32xf32>
    %250 = arith.mulf %249, %235 : vector<2x32xf32>
    %251 = vector.extract_strided_slice %246 {offsets = [0, 0], sizes = [2, 32], strides = [1, 1]} : vector<2x128xf32> to vector<2x32xf32>
    %252 = arith.mulf %251, %248 : vector<2x32xf32>
    %253 = arith.addf %250, %252 : vector<2x32xf32>
    %254 = vector.extract_strided_slice %246 {offsets = [0, 96], sizes = [2, 32], strides = [1, 1]} : vector<2x128xf32> to vector<2x32xf32>
    %255 = math.tanh %253 : vector<2x32xf32>
    %256 = arith.mulf %254, %255 : vector<2x32xf32>
    %257 = vector.extract_strided_slice %2 {offsets = [2, 0], sizes = [2, 32], strides = [1, 1]} : vector<16x32xi1> to vector<2x32xi1>
    %258 = arith.select %257, %253, %235 : vector<2x32xi1>, vector<2x32xf32>
    %259 = arith.select %257, %256, %236 : vector<2x32xi1>, vector<2x32xf32>
    %260 = arith.select %257, %256, %3 : vector<2x32xi1>, vector<2x32xf32>
    %c2_68 = arith.constant 2 : index
    %c0_69 = arith.constant 0 : index
    %261 = vector.load %arg15[%c2_68, %c0_69] : memref<16x32xf32, #tpu.memory_space<vmem>>, vector<2x32xf32>
    tpu.vector_store %arg15[%c2_68, %c0_69], %260 {strides = array<i32>} : memref<16x32xf32, #tpu.memory_space<vmem>>, vector<2x32xf32>,
    %262 = vector.extract_strided_slice %211 {offsets = [4, 0], sizes = [2, 128], strides = [1, 1]} : vector<16x128xf32> to vector<2x128xf32>
    %cst_70 = arith.constant dense<0.000000e+00> : vector<2x128xf32>
    %263 = tpu.matmul %259, %207, %cst_70 {dimension_numbers = #tpu.dot_dimension_numbers<[1], [0], [0], [1], [0, 0, 1, 1], [], []>} : vector<2x32xf32>, vector<32x128xf32>, vector<2x128xf32> -> vector<2x128xf32>
    %264 = arith.addf %262, %263 : vector<2x128xf32>
    %265 = arith.negf %264 : vector<2x128xf32>
    %266 = math.exp %265 : vector<2x128xf32>
    %cst_71 = arith.constant 1.000000e+00 : f32
    %267 = vector.broadcast %cst_71 : f32 to vector<2x128xf32>
    %268 = arith.addf %267, %266 : vector<2x128xf32>
    %269 = arith.divf %267, %268 : vector<2x128xf32>
    %270 = vector.extract_strided_slice %264 {offsets = [0, 64], sizes = [2, 32], strides = [1, 1]} : vector<2x128xf32> to vector<2x32xf32>
    %271 = math.tanh %270 : vector<2x32xf32>
    %272 = vector.extract_strided_slice %269 {offsets = [0, 32], sizes = [2, 32], strides = [1, 1]} : vector<2x128xf32> to vector<2x32xf32>
    %273 = arith.mulf %272, %258 : vector<2x32xf32>
    %274 = vector.extract_strided_slice %269 {offsets = [0, 0], sizes = [2, 32], strides = [1, 1]} : vector<2x128xf32> to vector<2x32xf32>
    %275 = arith.mulf %274, %271 : vector<2x32xf32>
    %276 = arith.addf %273, %275 : vector<2x32xf32>
    %277 = vector.extract_strided_slice %269 {offsets = [0, 96], sizes = [2, 32], strides = [1, 1]} : vector<2x128xf32> to vector<2x32xf32>
    %278 = math.tanh %276 : vector<2x32xf32>
    %279 = arith.mulf %277, %278 : vector<2x32xf32>
    %280 = vector.extract_strided_slice %2 {offsets = [4, 0], sizes = [2, 32], strides = [1, 1]} : vector<16x32xi1> to vector<2x32xi1>
    %281 = arith.select %280, %276, %258 : vector<2x32xi1>, vector<2x32xf32>
    %282 = arith.select %280, %279, %259 : vector<2x32xi1>, vector<2x32xf32>
    %283 = arith.select %280, %279, %3 : vector<2x32xi1>, vector<2x32xf32>
    %c4_72 = arith.constant 4 : index
    %c0_73 = arith.constant 0 : index
    %284 = vector.load %arg15[%c4_72, %c0_73] : memref<16x32xf32, #tpu.memory_space<vmem>>, vector<2x32xf32>
    tpu.vector_store %arg15[%c4_72, %c0_73], %283 {strides = array<i32>} : memref<16x32xf32, #tpu.memory_space<vmem>>, vector<2x32xf32>,
    %285 = vector.extract_strided_slice %211 {offsets = [6, 0], sizes = [2, 128], strides = [1, 1]} : vector<16x128xf32> to vector<2x128xf32>
    %cst_74 = arith.constant dense<0.000000e+00> : vector<2x128xf32>
    %286 = tpu.matmul %282, %207, %cst_74 {dimension_numbers = #tpu.dot_dimension_numbers<[1], [0], [0], [1], [0, 0, 1, 1], [], []>} : vector<2x32xf32>, vector<32x128xf32>, vector<2x128xf32> -> vector<2x128xf32>
    %287 = arith.addf %285, %286 : vector<2x128xf32>
    %288 = arith.negf %287 : vector<2x128xf32>
    %289 = math.exp %288 : vector<2x128xf32>
    %cst_75 = arith.constant 1.000000e+00 : f32
    %290 = vector.broadcast %cst_75 : f32 to vector<2x128xf32>
    %291 = arith.addf %290, %289 : vector<2x128xf32>
    %292 = arith.divf %290, %291 : vector<2x128xf32>
    %293 = vector.extract_strided_slice %287 {offsets = [0, 64], sizes = [2, 32], strides = [1, 1]} : vector<2x128xf32> to vector<2x32xf32>
    %294 = math.tanh %293 : vector<2x32xf32>
    %295 = vector.extract_strided_slice %292 {offsets = [0, 32], sizes = [2, 32], strides = [1, 1]} : vector<2x128xf32> to vector<2x32xf32>
    %296 = arith.mulf %295, %281 : vector<2x32xf32>
    %297 = vector.extract_strided_slice %292 {offsets = [0, 0], sizes = [2, 32], strides = [1, 1]} : vector<2x128xf32> to vector<2x32xf32>
    %298 = arith.mulf %297, %294 : vector<2x32xf32>
    %299 = arith.addf %296, %298 : vector<2x32xf32>
    %300 = vector.extract_strided_slice %292 {offsets = [0, 96], sizes = [2, 32], strides = [1, 1]} : vector<2x128xf32> to vector<2x32xf32>
    %301 = math.tanh %299 : vector<2x32xf32>
    %302 = arith.mulf %300, %301 : vector<2x32xf32>
    %303 = vector.extract_strided_slice %2 {offsets = [6, 0], sizes = [2, 32], strides = [1, 1]} : vector<16x32xi1> to vector<2x32xi1>
    %304 = arith.select %303, %299, %281 : vector<2x32xi1>, vector<2x32xf32>
    %305 = arith.select %303, %302, %282 : vector<2x32xi1>, vector<2x32xf32>
    %306 = arith.select %303, %302, %3 : vector<2x32xi1>, vector<2x32xf32>
    %c6_76 = arith.constant 6 : index
    %c0_77 = arith.constant 0 : index
    %307 = vector.load %arg15[%c6_76, %c0_77] : memref<16x32xf32, #tpu.memory_space<vmem>>, vector<2x32xf32>
    tpu.vector_store %arg15[%c6_76, %c0_77], %306 {strides = array<i32>} : memref<16x32xf32, #tpu.memory_space<vmem>>, vector<2x32xf32>,
    %308 = vector.extract_strided_slice %211 {offsets = [8, 0], sizes = [2, 128], strides = [1, 1]} : vector<16x128xf32> to vector<2x128xf32>
    %cst_78 = arith.constant dense<0.000000e+00> : vector<2x128xf32>
    %309 = tpu.matmul %305, %207, %cst_78 {dimension_numbers = #tpu.dot_dimension_numbers<[1], [0], [0], [1], [0, 0, 1, 1], [], []>} : vector<2x32xf32>, vector<32x128xf32>, vector<2x128xf32> -> vector<2x128xf32>
    %310 = arith.addf %308, %309 : vector<2x128xf32>
    %311 = arith.negf %310 : vector<2x128xf32>
    %312 = math.exp %311 : vector<2x128xf32>
    %cst_79 = arith.constant 1.000000e+00 : f32
    %313 = vector.broadcast %cst_79 : f32 to vector<2x128xf32>
    %314 = arith.addf %313, %312 : vector<2x128xf32>
    %315 = arith.divf %313, %314 : vector<2x128xf32>
    %316 = vector.extract_strided_slice %310 {offsets = [0, 64], sizes = [2, 32], strides = [1, 1]} : vector<2x128xf32> to vector<2x32xf32>
    %317 = math.tanh %316 : vector<2x32xf32>
    %318 = vector.extract_strided_slice %315 {offsets = [0, 32], sizes = [2, 32], strides = [1, 1]} : vector<2x128xf32> to vector<2x32xf32>
    %319 = arith.mulf %318, %304 : vector<2x32xf32>
    %320 = vector.extract_strided_slice %315 {offsets = [0, 0], sizes = [2, 32], strides = [1, 1]} : vector<2x128xf32> to vector<2x32xf32>
    %321 = arith.mulf %320, %317 : vector<2x32xf32>
    %322 = arith.addf %319, %321 : vector<2x32xf32>
    %323 = vector.extract_strided_slice %315 {offsets = [0, 96], sizes = [2, 32], strides = [1, 1]} : vector<2x128xf32> to vector<2x32xf32>
    %324 = math.tanh %322 : vector<2x32xf32>
    %325 = arith.mulf %323, %324 : vector<2x32xf32>
    %326 = vector.extract_strided_slice %2 {offsets = [8, 0], sizes = [2, 32], strides = [1, 1]} : vector<16x32xi1> to vector<2x32xi1>
    %327 = arith.select %326, %322, %304 : vector<2x32xi1>, vector<2x32xf32>
    %328 = arith.select %326, %325, %305 : vector<2x32xi1>, vector<2x32xf32>
    %329 = arith.select %326, %325, %3 : vector<2x32xi1>, vector<2x32xf32>
    %c8_80 = arith.constant 8 : index
    %c0_81 = arith.constant 0 : index
    %330 = vector.load %arg15[%c8_80, %c0_81] : memref<16x32xf32, #tpu.memory_space<vmem>>, vector<2x32xf32>
    tpu.vector_store %arg15[%c8_80, %c0_81], %329 {strides = array<i32>} : memref<16x32xf32, #tpu.memory_space<vmem>>, vector<2x32xf32>,
    %331 = vector.extract_strided_slice %211 {offsets = [10, 0], sizes = [2, 128], strides = [1, 1]} : vector<16x128xf32> to vector<2x128xf32>
    %cst_82 = arith.constant dense<0.000000e+00> : vector<2x128xf32>
    %332 = tpu.matmul %328, %207, %cst_82 {dimension_numbers = #tpu.dot_dimension_numbers<[1], [0], [0], [1], [0, 0, 1, 1], [], []>} : vector<2x32xf32>, vector<32x128xf32>, vector<2x128xf32> -> vector<2x128xf32>
    %333 = arith.addf %331, %332 : vector<2x128xf32>
    %334 = arith.negf %333 : vector<2x128xf32>
    %335 = math.exp %334 : vector<2x128xf32>
    %cst_83 = arith.constant 1.000000e+00 : f32
    %336 = vector.broadcast %cst_83 : f32 to vector<2x128xf32>
    %337 = arith.addf %336, %335 : vector<2x128xf32>
    %338 = arith.divf %336, %337 : vector<2x128xf32>
    %339 = vector.extract_strided_slice %333 {offsets = [0, 64], sizes = [2, 32], strides = [1, 1]} : vector<2x128xf32> to vector<2x32xf32>
    %340 = math.tanh %339 : vector<2x32xf32>
    %341 = vector.extract_strided_slice %338 {offsets = [0, 32], sizes = [2, 32], strides = [1, 1]} : vector<2x128xf32> to vector<2x32xf32>
    %342 = arith.mulf %341, %327 : vector<2x32xf32>
    %343 = vector.extract_strided_slice %338 {offsets = [0, 0], sizes = [2, 32], strides = [1, 1]} : vector<2x128xf32> to vector<2x32xf32>
    %344 = arith.mulf %343, %340 : vector<2x32xf32>
    %345 = arith.addf %342, %344 : vector<2x32xf32>
    %346 = vector.extract_strided_slice %338 {offsets = [0, 96], sizes = [2, 32], strides = [1, 1]} : vector<2x128xf32> to vector<2x32xf32>
    %347 = math.tanh %345 : vector<2x32xf32>
    %348 = arith.mulf %346, %347 : vector<2x32xf32>
    %349 = vector.extract_strided_slice %2 {offsets = [10, 0], sizes = [2, 32], strides = [1, 1]} : vector<16x32xi1> to vector<2x32xi1>
    %350 = arith.select %349, %345, %327 : vector<2x32xi1>, vector<2x32xf32>
    %351 = arith.select %349, %348, %328 : vector<2x32xi1>, vector<2x32xf32>
    %352 = arith.select %349, %348, %3 : vector<2x32xi1>, vector<2x32xf32>
    %c10_84 = arith.constant 10 : index
    %c0_85 = arith.constant 0 : index
    %353 = vector.load %arg15[%c10_84, %c0_85] : memref<16x32xf32, #tpu.memory_space<vmem>>, vector<2x32xf32>
    tpu.vector_store %arg15[%c10_84, %c0_85], %352 {strides = array<i32>} : memref<16x32xf32, #tpu.memory_space<vmem>>, vector<2x32xf32>,
    %354 = vector.extract_strided_slice %211 {offsets = [12, 0], sizes = [2, 128], strides = [1, 1]} : vector<16x128xf32> to vector<2x128xf32>
    %cst_86 = arith.constant dense<0.000000e+00> : vector<2x128xf32>
    %355 = tpu.matmul %351, %207, %cst_86 {dimension_numbers = #tpu.dot_dimension_numbers<[1], [0], [0], [1], [0, 0, 1, 1], [], []>} : vector<2x32xf32>, vector<32x128xf32>, vector<2x128xf32> -> vector<2x128xf32>
    %356 = arith.addf %354, %355 : vector<2x128xf32>
    %357 = arith.negf %356 : vector<2x128xf32>
    %358 = math.exp %357 : vector<2x128xf32>
    %cst_87 = arith.constant 1.000000e+00 : f32
    %359 = vector.broadcast %cst_87 : f32 to vector<2x128xf32>
    %360 = arith.addf %359, %358 : vector<2x128xf32>
    %361 = arith.divf %359, %360 : vector<2x128xf32>
    %362 = vector.extract_strided_slice %356 {offsets = [0, 64], sizes = [2, 32], strides = [1, 1]} : vector<2x128xf32> to vector<2x32xf32>
    %363 = math.tanh %362 : vector<2x32xf32>
    %364 = vector.extract_strided_slice %361 {offsets = [0, 32], sizes = [2, 32], strides = [1, 1]} : vector<2x128xf32> to vector<2x32xf32>
    %365 = arith.mulf %364, %350 : vector<2x32xf32>
    %366 = vector.extract_strided_slice %361 {offsets = [0, 0], sizes = [2, 32], strides = [1, 1]} : vector<2x128xf32> to vector<2x32xf32>
    %367 = arith.mulf %366, %363 : vector<2x32xf32>
    %368 = arith.addf %365, %367 : vector<2x32xf32>
    %369 = vector.extract_strided_slice %361 {offsets = [0, 96], sizes = [2, 32], strides = [1, 1]} : vector<2x128xf32> to vector<2x32xf32>
    %370 = math.tanh %368 : vector<2x32xf32>
    %371 = arith.mulf %369, %370 : vector<2x32xf32>
    %372 = vector.extract_strided_slice %2 {offsets = [12, 0], sizes = [2, 32], strides = [1, 1]} : vector<16x32xi1> to vector<2x32xi1>
    %373 = arith.select %372, %368, %350 : vector<2x32xi1>, vector<2x32xf32>
    %374 = arith.select %372, %371, %351 : vector<2x32xi1>, vector<2x32xf32>
    %375 = arith.select %372, %371, %3 : vector<2x32xi1>, vector<2x32xf32>
    %c12_88 = arith.constant 12 : index
    %c0_89 = arith.constant 0 : index
    %376 = vector.load %arg15[%c12_88, %c0_89] : memref<16x32xf32, #tpu.memory_space<vmem>>, vector<2x32xf32>
    tpu.vector_store %arg15[%c12_88, %c0_89], %375 {strides = array<i32>} : memref<16x32xf32, #tpu.memory_space<vmem>>, vector<2x32xf32>,
    %377 = vector.extract_strided_slice %211 {offsets = [14, 0], sizes = [2, 128], strides = [1, 1]} : vector<16x128xf32> to vector<2x128xf32>
    %cst_90 = arith.constant dense<0.000000e+00> : vector<2x128xf32>
    %378 = tpu.matmul %374, %207, %cst_90 {dimension_numbers = #tpu.dot_dimension_numbers<[1], [0], [0], [1], [0, 0, 1, 1], [], []>} : vector<2x32xf32>, vector<32x128xf32>, vector<2x128xf32> -> vector<2x128xf32>
    %379 = arith.addf %377, %378 : vector<2x128xf32>
    %380 = arith.negf %379 : vector<2x128xf32>
    %381 = math.exp %380 : vector<2x128xf32>
    %cst_91 = arith.constant 1.000000e+00 : f32
    %382 = vector.broadcast %cst_91 : f32 to vector<2x128xf32>
    %383 = arith.addf %382, %381 : vector<2x128xf32>
    %384 = arith.divf %382, %383 : vector<2x128xf32>
    %385 = vector.extract_strided_slice %379 {offsets = [0, 64], sizes = [2, 32], strides = [1, 1]} : vector<2x128xf32> to vector<2x32xf32>
    %386 = math.tanh %385 : vector<2x32xf32>
    %387 = vector.extract_strided_slice %384 {offsets = [0, 32], sizes = [2, 32], strides = [1, 1]} : vector<2x128xf32> to vector<2x32xf32>
    %388 = arith.mulf %387, %373 : vector<2x32xf32>
    %389 = vector.extract_strided_slice %384 {offsets = [0, 0], sizes = [2, 32], strides = [1, 1]} : vector<2x128xf32> to vector<2x32xf32>
    %390 = arith.mulf %389, %386 : vector<2x32xf32>
    %391 = arith.addf %388, %390 : vector<2x32xf32>
    %392 = vector.extract_strided_slice %384 {offsets = [0, 96], sizes = [2, 32], strides = [1, 1]} : vector<2x128xf32> to vector<2x32xf32>
    %393 = math.tanh %391 : vector<2x32xf32>
    %394 = arith.mulf %392, %393 : vector<2x32xf32>
    %395 = vector.extract_strided_slice %2 {offsets = [14, 0], sizes = [2, 32], strides = [1, 1]} : vector<16x32xi1> to vector<2x32xi1>
    %396 = arith.select %395, %391, %373 : vector<2x32xi1>, vector<2x32xf32>
    %397 = arith.select %395, %394, %374 : vector<2x32xi1>, vector<2x32xf32>
    %398 = arith.select %395, %394, %3 : vector<2x32xi1>, vector<2x32xf32>
    %c14_92 = arith.constant 14 : index
    %c0_93 = arith.constant 0 : index
    %399 = vector.load %arg15[%c14_92, %c0_93] : memref<16x32xf32, #tpu.memory_space<vmem>>, vector<2x32xf32>
    tpu.vector_store %arg15[%c14_92, %c0_93], %398 {strides = array<i32>} : memref<16x32xf32, #tpu.memory_space<vmem>>, vector<2x32xf32>,
    %c1_94 = arith.constant 1 : index
    %c0_95 = arith.constant 0 : index
    %c0_96 = arith.constant 0 : index
    %400 = vector.load %arg13[%c1_94, %c0_95, %c0_96] : memref<2x2x32xf32, #tpu.memory_space<vmem>>, vector<1x2x32xf32>
    %401 = vector.shape_cast %400 : vector<1x2x32xf32> to vector<2x32xf32>
    %402 = vector.shape_cast %397 : vector<2x32xf32> to vector<1x2x32xf32>
    tpu.vector_store %arg13[%c1_94, %c0_95, %c0_96], %402 {strides = array<i32>} : memref<2x2x32xf32, #tpu.memory_space<vmem>>, vector<1x2x32xf32>,
    %c1_97 = arith.constant 1 : index
    %c0_98 = arith.constant 0 : index
    %c0_99 = arith.constant 0 : index
    %403 = vector.load %arg14[%c1_97, %c0_98, %c0_99] : memref<2x2x32xf32, #tpu.memory_space<vmem>>, vector<1x2x32xf32>
    %404 = vector.shape_cast %403 : vector<1x2x32xf32> to vector<2x32xf32>
    %405 = vector.shape_cast %396 : vector<2x32xf32> to vector<1x2x32xf32>
    tpu.vector_store %arg14[%c1_97, %c0_98, %c0_99], %405 {strides = array<i32>} : memref<2x2x32xf32, #tpu.memory_space<vmem>>, vector<1x2x32xf32>,
    %c0_100 = arith.constant 0 : index
    %c0_101 = arith.constant 0 : index
    %406 = vector.load %arg15[%c0_100, %c0_101] : memref<16x32xf32, #tpu.memory_space<vmem>>, vector<16x32xf32>
    %c0_102 = arith.constant 0 : index
    %c0_103 = arith.constant 0 : index
    %407 = vector.load %arg10[%c0_102, %c0_103] : memref<32x20xf32, #tpu.memory_space<vmem>>, vector<32x20xf32>
    %cst_104 = arith.constant dense<0.000000e+00> : vector<16x20xf32>
    %408 = tpu.matmul %406, %407, %cst_104 {dimension_numbers = #tpu.dot_dimension_numbers<[1], [0], [0], [1], [0, 0, 1, 1], [], []>} : vector<16x32xf32>, vector<32x20xf32>, vector<16x20xf32> -> vector<16x20xf32>
    %c0_105 = arith.constant 0 : index
    %c0_106 = arith.constant 0 : index
    %409 = vector.load %arg11[%c0_105, %c0_106] : memref<1x20xf32, #tpu.memory_space<vmem>>, vector<1x20xf32>
    %410 = vector.broadcast %409 : vector<1x20xf32> to vector<16x20xf32>
    %411 = arith.addf %408, %410 : vector<16x20xf32>
    %c0_107 = arith.constant 0 : index
    %c0_108 = arith.constant 0 : index
    %412 = vector.load %arg12[%c0_107, %c0_108] : memref<16x20xf32, #tpu.memory_space<vmem>>, vector<16x20xf32>
    tpu.vector_store %arg12[%c0_107, %c0_108], %411 {strides = array<i32>} : memref<16x20xf32, #tpu.memory_space<vmem>>, vector<16x20xf32>,
    return
  }
}

</mosaic_0001>

<bundles_post_ra>
// kernel: tpu_custom_call.1
= control target key start
LH: loop header
LB: loop body
LE: loop exit
PB: predicated region body
PF: predicated region fallthrough
CT: control target
= control target key end

     0   :  { %20 = vsyncpa [#allocation4], 0  ;;  %s3666_s0 = inlined_call_operand.vmem [shape: f32[16,8], index: 0, kind: input, shape index: {}]   ;;  %s3667_s1 = inlined_call_operand.hbm [shape: f32[16,32], index: 1, kind: input, shape index: {}]   ;;  %s3668_s2 = inlined_call_operand.hbm [shape: f32[2,2,32], index: 2, kind: input, shape index: {}]   ;;  %s3669_s3 = inlined_call_operand.hbm [shape: f32[2,2,32], index: 3, kind: input, shape index: {}]   ;;  %s3670_s4 = inlined_call_operand.vmem [shape: f32[8,128], index: 4, kind: input, shape index: {}]   ;;  %s3671_s5 = inlined_call_operand.vmem [shape: f32[32,128], index: 5, kind: input, shape index: {}]   ;;  %s3672_s6 = inlined_call_operand.vmem [shape: f32[1,128], index: 6, kind: input, shape index: {}]   ;;  %s3673_s7 = inlined_call_operand.vmem [shape: f32[32,128], index: 7, kind: input, shape index: {}]   ;;  %s3674_s8 = inlined_call_operand.hbm [shape: f32[32,128], index: 8, kind: input, shape index: {}]   ;;  %s3675_s9 = inlined_call_operand.vmem [shape: f32[1,128], index: 9, kind: input, shape index: {}]   ;;  %s3676_s10 = inlined_call_operand.vmem [shape: f32[32,20], index: 10, kind: input, shape index: {}]   ;;  %s3677_s11 = inlined_call_operand.vmem [shape: f32[1,20], index: 11, kind: input, shape index: {}]   ;;  %s3678_s12 = inlined_call_operand.hbm [shape: f32[16,20], index: 12, kind: output, shape index: {0}]   ;;  %s3679_s13 = inlined_call_operand.hbm [shape: f32[2,2,32], index: 13, kind: output, shape index: {1}]   ;;  %s3680_s14 = inlined_call_operand.hbm [shape: f32[2,2,32], index: 14, kind: output, shape index: {2}]  }
   0x1   :  { %21 = vsyncpa [#allocation7], 0 }
   0x2   :  { %22 = vsyncpa [#allocation10], 0 }
   0x3   :  { %23 = vsyncpa [#allocation5], 0 }
   0x4   :  { %24 = vsyncpa [#allocation13], 0  ;;  %s3019_s29 = smov [#allocation6]  }
   0x5   :  { %s44_s30 = sshll.u32 %s3019_s29, 4  ;;  %s45_s30 = int_to_ptr.vmem [resolvable:$true] %s44_s30 }
   0x6   :  { %s2877_s15 = scalar_lea.vmem %s45_s30, 64  ;;  %p2882_p1 = scmp.lt.s32.totalorder %s45_s30, %s45_s30 }
   0x7   :  { %p2878_p0 = scmp.ne.s32.totalorder %s45_s30, %s2877_s15  ;;  %p2883_p2 = scmp.lt.s32.totalorder %s2877_s15, %s2877_s15 }
   0x9   :  { %p2884_p3 = por %p2883_p2, %p2882_p1 }
   0xb   :  { %p2885_p4 = pnand %p2884_p3, %p2878_p0 }
   0xd   :  { %2888 = shalt.err (!%p2885_p4)
}
   0xe   :  { %s3020_s16 = smov 32   ;;  %s3021_s17 = smov 2  }
   0xf   :  { %50 = dma.hbm_to_vmem [thread:$0]  %s3668_s2, 64, %s45_s30, [#allocation7], %s3020_s16, %s3020_s16, %s3021_s17  }
  0x10   :  { %s3022_s20 = smov [#allocation3]  }
  0x11   :  { %s32_s21 = sshll.u32 %s3022_s20, 4  ;;  %s33_s21 = int_to_ptr.vmem [resolvable:$true] %s32_s21 }
  0x12   :  { %s2897_s22 = scalar_lea.vmem %s33_s21, 256  ;;  %p2902_p6 = scmp.lt.s32.totalorder %s33_s21, %s33_s21 }
  0x13   :  { %p2898_p5 = scmp.ne.s32.totalorder %s33_s21, %s2897_s22  ;;  %p2903_p7 = scmp.lt.s32.totalorder %s2897_s22, %s2897_s22 }
  0x15   :  { %p2904_p8 = por %p2903_p7, %p2902_p6 }
  0x17   :  { %p2905_p9 = pnand %p2904_p8, %p2898_p5 }
  0x19   :  { %2908 = shalt.err (!%p2905_p9)
}
  0x1a   :  { %s3023_s23 = smov 128   ;;  %s3024_s24 = smov 8  }
  0x1b   :  { %38 = dma.hbm_to_vmem [thread:$0]  %s3667_s1, 256, %s33_s21, [#allocation4], %s3023_s23, %s3023_s23, %s3024_s24  }
  0x1c   :  { %s3025_s2 = smov [#allocation8]   ;;  %s3026_s28 = smov [#allocation9]  }
  0x1d   :  { %s56_s27 = sshll.u32 %s3025_s2, 4  ;;  %s76_s29 = sshll.u32 %s3026_s28, 4  ;;  %s57_s27 = int_to_ptr.vmem [resolvable:$true] %s56_s27  ;;  %s77_s29 = int_to_ptr.vmem [resolvable:$true] %s76_s29 }
  0x1e   :  { %s2917_s30 = scalar_lea.vmem %s57_s27, 64  ;;  %p2922_p11 = scmp.lt.s32.totalorder %s57_s27, %s57_s27 }
  0x1f   :  { %p2918_p10 = scmp.ne.s32.totalorder %s57_s27, %s2917_s30  ;;  %p2923_p12 = scmp.lt.s32.totalorder %s2917_s30, %s2917_s30 }
  0x21   :  { %p2924_p13 = por %p2923_p12, %p2922_p11 }
  0x23   :  { %p2925_p0 = pnand %p2924_p13, %p2918_p10 }
  0x25   :  { %2928 = shalt.err (!%p2925_p0)
}
  0x26   :  { %62 = dma.hbm_to_vmem [thread:$0]  %s3669_s3, 64, %s57_s27, [#allocation7], %s3020_s16, %s3020_s16, %s3021_s17  }
  0x27   :  { %s2937_s1 = scalar_lea.vmem %s77_s29, 512  ;;  %p2942_p2 = scmp.lt.s32.totalorder %s77_s29, %s77_s29 }
  0x28   :  { %p2938_p1 = scmp.ne.s32.totalorder %s77_s29, %s2937_s1  ;;  %p2943_p3 = scmp.lt.s32.totalorder %s2937_s1, %s2937_s1 }
  0x2a   :  { %p2944_p4 = por %p2943_p3, %p2942_p2 }
  0x2c   :  { %p2945_p5 = pnand %p2944_p4, %p2938_p1 }
  0x2e   :  { %2948 = shalt.err (!%p2945_p5)
}
  0x2f   :  { %82 = dma.hbm_to_vmem [thread:$0]  %s3674_s8, 512, %s77_s29, [#allocation10], %s3023_s23, %s3023_s23, %s3024_s24  }
  0x30   :  { %3009 = dma.done.wait [#allocation4], 256  }
  0x31   :  { %3010 = vsyncadd [#allocation4], 4294967040 }
  0x32   :  { %3011 = dma.done.wait [#allocation7], 128  }
  0x33   :  { %3012 = vsyncadd [#allocation7], 4294967168 }
  0x34   :  { %3013 = dma.done.wait [#allocation10], 512  }
  0x35   :  { %3014 = vsyncadd [#allocation10], 4294966784  ;;  %v3027_v0 = vmov 0.0   ;;  %vm3028_vm0 = vmmov 0   ;;  %vm119_vm1 = vcmask 64512   ;;  %v107_v1 = vld [vmem:[%s3670_s4] sm:$0xff] }
  0x36   :  { %2528 = vmatprep.subr.mxu1 %v3027_v0  ;;  %2536 = vmatprep.mubr.msk.f32.mxu1 %vm3028_vm0, %v3027_v0  ;;  %v3142_v2 = vld [vmem:[%s3671_s5 + $0x18] sm:$0xff]  ;;  %v105_v3 = vld [vmem:[%s3666_s0] sm:$0xff]  ;;  %v106_v4 = vld [vmem:[%s3666_s0 + $0x8] sm:$0xff]  ;;  %vm203_vm2 = vcmask 261120   ;;  %s3029_s1 = smov 64   ;;  %vm317_vm4 = vcmask 254976  }
  0x37   :  { %2523 = vmatprep.subr.mxu0 %v107_v1  ;;  %2529 = vmatpush3.msra.mxu1 %v3142_v2  ;;  %v3154_v5 = vld [vmem:[%s3671_s5 + $0x10] sm:$0xff]  ;;  %v3160_v6 = vld [vmem:[%s3671_s5 + $0x8] sm:$0xff]  ;;  %v3168_v7 = vld [vmem:[%s3671_s5] sm:$0xff]  ;;  %vm439_vm5 = vcmask 257026   ;;  %vm562_vm6 = vcmask 259076   ;;  %vm685_vm7 = vcmask 261126  }
  0x38   :  { %2524 = vmatpush3.msra.mxu0 %v107_v1  ;;  %2525 = vmatprep.mubr.msk.f32.mxu0 %vm119_vm1, %v105_v3  ;;  %v3172_v8 = vld [vmem:[#allocation6] sm:$0x3]  ;;  %v202_v18 = vld [vmem:[#allocation8] sm:$0x3]  ;;  %v3211_v30 = vld [vmem:[#allocation3] sm:$0xff] }
  0x39   :  { %2530 = vmatprep.subr.mxu1 %v3027_v0  ;;  %2526 = vmatmul.mubr.msk.f32.vlgmr.msra.gmra.mxu0 %vm119_vm1, %v106_v4  ;;  %v2387_v9 = vld [vmem:[%s3672_s6] ss:$0 sm:$0xff]  ;;  %s3030_s6 = smov 96   ;;  %vm103_vm3 = vcmp.gt.f32.partialorder %v3211_v30, 0.5 }
  0x3a   :  { %2531 = vmatpush3.msra.mxu1 %v3154_v5  ;;  %2539 = vmatprep.subr.mxu0 %v3027_v0 }
  0x3b   :  { %2532 = vmatprep.subr.mxu1 %v3027_v0  ;;  %2540 = vmatpush3.msra.mxu0 %v3142_v2 }
  0x3c   :  { %2533 = vmatpush3.msra.mxu1 %v3160_v6  ;;  %2541 = vmatprep.subr.mxu0 %v3027_v0 }
  0x3d   :  { %2534 = vmatprep.subr.mxu1 %v3027_v0  ;;  %2542 = vmatpush3.msra.mxu0 %v3154_v5 }
  0x3e   :  { %2535 = vmatpush3.msra.mxu1 %v3168_v7  ;;  %2543 = vmatprep.subr.mxu0 %v3027_v0 }
  0x3f   :  { %2537 = vmatmul.mubr.msk.f32.vlgmr.msra.gmra.mxu1 %vm203_vm2, %v3172_v8  ;;  %2544 = vmatpush3.msra.mxu0 %v3160_v6 }
  0x40   :  { %2545 = vmatprep.subr.mxu0 %v3027_v0  ;;  %2547 = vmatprep.mubr.msk.f32.mxu0 %vm3028_vm0, %v3027_v0 }
  0x41   :  { %2546 = vmatpush3.msra.mxu0 %v3168_v7  ;;  %2550 = vmatprep.subr.mxu1 %v3027_v0 }
  0x42   :  { %2551 = vmatpush3.msra.mxu1 %v3142_v2  ;;  %2558 = vmatprep.mubr.msk.f32.mxu1 %vm3028_vm0, %v3027_v0 }
  0x43   :  { %2552 = vmatprep.subr.mxu1 %v3027_v0  ;;  %2561 = vmatprep.subr.mxu0 %v3027_v0 }
  0x44   :  { %2553 = vmatpush3.msra.mxu1 %v3154_v5 }
  0x45   :  { %2554 = vmatprep.subr.mxu1 %v3027_v0 }
  0x46   :  { %2555 = vmatpush3.msra.mxu1 %v3160_v6 }
  0x47   :  { %2556 = vmatprep.subr.mxu1 %v3027_v0 }
  0x48   :  { %2557 = vmatpush3.msra.mxu1 %v3168_v7 }
  0x49   :  { %2572 = vmatprep.subr.mxu1 %v3027_v0 }
  0xf9   :  { %v2527_v10 = vpop.f32.mrf.mxu0 }
  0xfa   :  { %v3201_v11 = vadd.f32 %v2527_v10, %v2387_v9 }
  0xfb   :  { %v192_v12 = vpop.f32.mrf.mxu0 }
  0xfc   :  { %v3203_v13 = vadd.f32 %v2387_v9, %v192_v12 }
  0xff   :  { %v273_v14 = vpop.f32.mrf.mxu1 }
 0x100   :  { %v277_v15 = vadd.f32 %v273_v14, %v3203_v13 }
 0x101   :  { %v2538_v16 = vpop.f32.mrf.mxu1 }
 0x102   :  { %2741 = vtanh.f32 %v277_v15  ;;  %v2391_v19 = vmul.f32 -1.442695, %v277_v15 }
 0x104   :  { %2743 = vpow2.f32 %v2391_v19 }
 0x10f   :  { %v2742_v17 = vpop.eup %2741 }
 0x110   :  { %291 = vrot.lane.b32.xlu0 %v2742_v17, %s3029_s1 }
 0x111   :  { %v2744_v20 = vpop.eup %2743 }
 0x112   :  { %v281_v21 = vadd.f32 1.0, %v2744_v20 }
 0x114   :  { %286 = vrot.lane.b32.xlu0 %v202_v18, %s3020_s16  ;;  %2745 = vrcp.f32 %v281_v21 }
 0x121   :  { %v2746_v22 = vpop.eup %2745 }
 0x182   :  { %v292_v23 = vpop.permute.xlu0 %291 }
 0x183   :  { %v294_v24 = vmul.f32 %v2746_v22, %v292_v23 }
 0x185   :  { %296 = vrot.lane.b32.xlu1 %v294_v24, %s3020_s16 }
 0x186   :  { %v287_v25 = vpop.permute.xlu0 %286 }
 0x187   :  { %v289_v26 = vmul.f32 %v2746_v22, %v287_v25 }
 0x1f7   :  { %v297_v27 = vpop.permute.xlu1 %296 }
 0x1f8   :  { %v299_v28 = vadd.f32 %v297_v27, %v289_v26 }
 0x1fa   :  { %2747 = vtanh.f32 %v299_v28 }
 0x207   :  { %v2748_v29 = vpop.eup %2747 }
 0x208   :  { %302 = vrot.lane.b32.xlu1 %v2748_v29, %s3029_s1 }
 0x20c   :  { %307 = vrot.lane.b32.xlu1 %v299_v28, %s3030_s6 }
 0x27a   :  { %v303_v31 = vpop.permute.xlu1 %302 }
 0x27b   :  { %v305_v32 = vmul.f32 %v2746_v22, %v303_v31 }
 0x27d   :  { %312 = vrot.lane.b32.xlu0 %v305_v32, %s3020_s16 }
 0x27e   :  { %v308_v33 = vpop.permute.xlu1 %307 }
 0x27f   :  { %v310_v34 = vsel %vm103_vm3, %v308_v33, %v202_v18 }
 0x280   :  { %v404_v35 = vrot.slane %v310_v34, 6 }
 0x282   :  { %405 = vrot.lane.b32.xlu1 %v404_v35, %s3020_s16 }
 0x2ef   :  { %v313_v36 = vpop.permute.xlu0 %312 }
 0x2f0   :  { %v315_v37 = vsel %vm103_vm3, %v313_v36, %v3172_v8  ;;  %v316_v38 = vsel %vm103_vm3, %v313_v36, 0.0 }
 0x2f1   :  { %318 = vst.msk [vmem:[#allocation2] sm:$0x3] %vm317_vm4, %v316_v38  ;;  %2548 = vmatmul.mubr.msk.f32.vlgmr.msra.gmra.mxu0 %vm203_vm2, %v315_v37  ;;  %v435_v60 = vrot.slane %v315_v37, 6 }
 0x2f2   :  { %2562 = vmatpush3.msra.mxu0 %v3142_v2  ;;  %2569 = vmatprep.mubr.msk.f32.mxu0 %vm3028_vm0, %v3027_v0 }
 0x2f3   :  { %2563 = vmatprep.subr.mxu0 %v3027_v0 }
 0x2f4   :  { %2564 = vmatpush3.msra.mxu0 %v3154_v5  ;;  %v406_v50 = vpop.permute.xlu1 %405 }
 0x2f5   :  { %2565 = vmatprep.subr.mxu0 %v3027_v0 }
 0x2f6   :  { %2566 = vmatpush3.msra.mxu0 %v3160_v6 }
 0x2f7   :  { %2567 = vmatprep.subr.mxu0 %v3027_v0 }
 0x2f8   :  { %2568 = vmatpush3.msra.mxu0 %v3168_v7 }
 0x2f9   :  { %2583 = vmatprep.subr.mxu0 %v3027_v0 }
 0x3b1   :  { %v388_v39 = vpop.f32.mrf.mxu0 }
 0x3b2   :  { %v393_v40 = vrot.slane %v388_v39, 6 }
 0x3b3   :  { %v2549_v41 = vpop.f32.mrf.mxu0 }
 0x3b4   :  { %v395_v42 = vadd.f32 %v393_v40, %v3203_v13 }
 0x3b6   :  { %2749 = vtanh.f32 %v395_v42  ;;  %v2393_v44 = vmul.f32 -1.442695, %v395_v42 }
 0x3b8   :  { %2751 = vpow2.f32 %v2393_v44 }
 0x3c3   :  { %v2750_v43 = vpop.eup %2749 }
 0x3c4   :  { %410 = vrot.lane.b32.xlu0 %v2750_v43, %s3029_s1 }
 0x3c5   :  { %v2752_v45 = vpop.eup %2751 }
 0x3c6   :  { %v399_v46 = vadd.f32 1.0, %v2752_v45 }
 0x3c8   :  { %2753 = vrcp.f32 %v399_v46 }
 0x3d5   :  { %v2754_v47 = vpop.eup %2753 }
 0x3d6   :  { %v408_v51 = vmul.f32 %v2754_v47, %v406_v50 }
 0x436   :  { %v411_v48 = vpop.permute.xlu0 %410 }
 0x437   :  { %v413_v49 = vmul.f32 %v2754_v47, %v411_v48 }
 0x439   :  { %415 = vrot.lane.b32.xlu0 %v413_v49, %s3020_s16 }
 0x4ab   :  { %v416_v52 = vpop.permute.xlu0 %415 }
 0x4ac   :  { %v418_v53 = vadd.f32 %v416_v52, %v408_v51 }
 0x4ae   :  { %2755 = vtanh.f32 %v418_v53 }
 0x4bb   :  { %v2756_v54 = vpop.eup %2755 }
 0x4bc   :  { %421 = vrot.lane.b32.xlu1 %v2756_v54, %s3029_s1 }
 0x4c0   :  { %426 = vrot.lane.b32.xlu1 %v418_v53, %s3030_s6 }
 0x52e   :  { %v422_v55 = vpop.permute.xlu1 %421 }
 0x52f   :  { %v424_v56 = vmul.f32 %v2754_v47, %v422_v55 }
 0x531   :  { %432 = vrot.lane.b32.xlu0 %v424_v56, %s3020_s16 }
 0x532   :  { %v427_v57 = vpop.permute.xlu1 %426 }
 0x533   :  { %v430_v58 = vsel %vm103_vm3, %v427_v57, %v404_v35 }
 0x534   :  { %v527_v59 = vrot.slane %v430_v58, 6 }
 0x536   :  { %528 = vrot.lane.b32.xlu1 %v527_v59, %s3020_s16 }
 0x5a3   :  { %v433_v61 = vpop.permute.xlu0 %432 }
 0x5a4   :  { %v437_v62 = vsel %vm103_vm3, %v433_v61, %v435_v60  ;;  %v438_v63 = vsel %vm103_vm3, %v433_v61, 0.0 }
 0x5a5   :  { %440 = vst.msk [vmem:[#allocation2] sm:$0xc] %vm439_vm5, %v438_v63  ;;  %v442_v1 = vrot.slane %v437_v62, 2  ;;  %v558_v29 = vrot.slane %v437_v62, 6 }
 0x5a7   :  { %2559 = vmatmul.mubr.msk.f32.vlgmr.msra.gmra.mxu1 %vm203_vm2, %v442_v1 }
 0x5a8   :  { %2573 = vmatpush3.msra.mxu1 %v3142_v2  ;;  %2580 = vmatprep.mubr.msk.f32.mxu1 %vm3028_vm0, %v3027_v0  ;;  %v529_v19 = vpop.permute.xlu1 %528 }
 0x5a9   :  { %2574 = vmatprep.subr.mxu1 %v3027_v0 }
 0x5aa   :  { %2575 = vmatpush3.msra.mxu1 %v3154_v5 }
 0x5ab   :  { %2576 = vmatprep.subr.mxu1 %v3027_v0 }
 0x5ac   :  { %2577 = vmatpush3.msra.mxu1 %v3160_v6 }
 0x5ad   :  { %2578 = vmatprep.subr.mxu1 %v3027_v0 }
 0x5ae   :  { %2579 = vmatpush3.msra.mxu1 %v3168_v7 }
 0x5af   :  { %2594 = vmatprep.subr.mxu1 %v3027_v0 }
 0x667   :  { %v511_v3 = vpop.f32.mrf.mxu1 }
 0x668   :  { %v516_v4 = vrot.slane %v511_v3, 4 }
 0x669   :  { %v2560_v8 = vpop.f32.mrf.mxu1 }
 0x66a   :  { %v518_v9 = vadd.f32 %v516_v4, %v3203_v13 }
 0x66c   :  { %2757 = vtanh.f32 %v518_v9  ;;  %v2395_v12 = vmul.f32 -1.442695, %v518_v9 }
 0x66e   :  { %2759 = vpow2.f32 %v2395_v12 }
 0x679   :  { %v2758_v10 = vpop.eup %2757 }
 0x67a   :  { %533 = vrot.lane.b32.xlu0 %v2758_v10, %s3029_s1 }
 0x67b   :  { %v2760_v14 = vpop.eup %2759 }
 0x67c   :  { %v522_v15 = vadd.f32 1.0, %v2760_v14 }
 0x67e   :  { %2761 = vrcp.f32 %v522_v15 }
 0x68b   :  { %v2762_v16 = vpop.eup %2761 }
 0x68c   :  { %v531_v20 = vmul.f32 %v2762_v16, %v529_v19 }
 0x6ec   :  { %v534_v17 = vpop.permute.xlu0 %533 }
 0x6ed   :  { %v536_v18 = vmul.f32 %v2762_v16, %v534_v17 }
 0x6ef   :  { %538 = vrot.lane.b32.xlu0 %v536_v18, %s3020_s16  ;;  %v3314_v18 = vld [vmem:[#allocation3 + $0x8] sm:$0xff] }
 0x6f0   :  { %vm104_vm8 = vcmp.gt.f32.partialorder %v3314_v18, 0.5 }
 0x761   :  { %v539_v21 = vpop.permute.xlu0 %538 }
 0x762   :  { %v541_v22 = vadd.f32 %v539_v21, %v531_v20 }
 0x764   :  { %2763 = vtanh.f32 %v541_v22 }
 0x771   :  { %v2764_v23 = vpop.eup %2763 }
 0x772   :  { %544 = vrot.lane.b32.xlu1 %v2764_v23, %s3029_s1 }
 0x776   :  { %549 = vrot.lane.b32.xlu1 %v541_v22, %s3030_s6 }
 0x7e4   :  { %v545_v24 = vpop.permute.xlu1 %544 }
 0x7e5   :  { %v547_v25 = vmul.f32 %v2762_v16, %v545_v24 }
 0x7e7   :  { %555 = vrot.lane.b32.xlu0 %v547_v25, %s3020_s16 }
 0x7e8   :  { %v550_v26 = vpop.permute.xlu1 %549 }
 0x7e9   :  { %v553_v27 = vsel %vm103_vm3, %v550_v26, %v527_v59 }
 0x7ea   :  { %v650_v28 = vrot.slane %v553_v27, 6 }
 0x7ec   :  { %651 = vrot.lane.b32.xlu1 %v650_v28, %s3020_s16 }
 0x859   :  { %v556_v31 = vpop.permute.xlu0 %555 }
 0x85a   :  { %v560_v32 = vsel %vm103_vm3, %v556_v31, %v558_v29  ;;  %v561_v33 = vsel %vm103_vm3, %v556_v31, 0.0 }
 0x85b   :  { %563 = vst.msk [vmem:[#allocation2] sm:$0x30] %vm562_vm6, %v561_v33  ;;  %v565_v34 = vrot.slane %v560_v32, 4  ;;  %v681_v55 = vrot.slane %v560_v32, 6 }
 0x85d   :  { %2570 = vmatmul.mubr.msk.f32.vlgmr.msra.gmra.mxu0 %vm203_vm2, %v565_v34 }
 0x85e   :  { %2584 = vmatpush3.msra.mxu0 %v3142_v2  ;;  %2591 = vmatprep.mubr.msk.f32.mxu0 %vm3028_vm0, %v3027_v0  ;;  %v652_v46 = vpop.permute.xlu1 %651 }
 0x85f   :  { %2585 = vmatprep.subr.mxu0 %v3027_v0 }
 0x860   :  { %2586 = vmatpush3.msra.mxu0 %v3154_v5 }
 0x861   :  { %2587 = vmatprep.subr.mxu0 %v3027_v0 }
 0x862   :  { %2588 = vmatpush3.msra.mxu0 %v3160_v6 }
 0x863   :  { %2589 = vmatprep.subr.mxu0 %v3027_v0 }
 0x864   :  { %2590 = vmatpush3.msra.mxu0 %v3168_v7 }
 0x865   :  { %2605 = vmatprep.subr.mxu0 %v3027_v0 }
 0x91d   :  { %v634_v35 = vpop.f32.mrf.mxu0 }
 0x91e   :  { %v639_v36 = vrot.slane %v634_v35, 2 }
 0x91f   :  { %v2571_v37 = vpop.f32.mrf.mxu0 }
 0x920   :  { %v641_v38 = vadd.f32 %v639_v36, %v3203_v13 }
 0x922   :  { %2765 = vtanh.f32 %v641_v38  ;;  %v2397_v40 = vmul.f32 -1.442695, %v641_v38 }
 0x924   :  { %2767 = vpow2.f32 %v2397_v40 }
 0x92f   :  { %v2766_v39 = vpop.eup %2765 }
 0x930   :  { %656 = vrot.lane.b32.xlu0 %v2766_v39, %s3029_s1 }
 0x931   :  { %v2768_v41 = vpop.eup %2767 }
 0x932   :  { %v645_v42 = vadd.f32 1.0, %v2768_v41 }
 0x934   :  { %2769 = vrcp.f32 %v645_v42 }
 0x941   :  { %v2770_v43 = vpop.eup %2769 }
 0x942   :  { %v654_v47 = vmul.f32 %v2770_v43, %v652_v46 }
 0x9a2   :  { %v657_v44 = vpop.permute.xlu0 %656 }
 0x9a3   :  { %v659_v45 = vmul.f32 %v2770_v43, %v657_v44 }
 0x9a5   :  { %661 = vrot.lane.b32.xlu0 %v659_v45, %s3020_s16 }
 0xa17   :  { %v662_v48 = vpop.permute.xlu0 %661 }
 0xa18   :  { %v664_v49 = vadd.f32 %v662_v48, %v654_v47 }
 0xa1a   :  { %2771 = vtanh.f32 %v664_v49 }
 0xa27   :  { %v2772_v13 = vpop.eup %2771 }
 0xa28   :  { %667 = vrot.lane.b32.xlu1 %v2772_v13, %s3029_s1 }
 0xa2c   :  { %672 = vrot.lane.b32.xlu1 %v664_v49, %s3030_s6 }
 0xa9a   :  { %v668_v50 = vpop.permute.xlu1 %667 }
 0xa9b   :  { %v670_v51 = vmul.f32 %v2770_v43, %v668_v50 }
 0xa9d   :  { %678 = vrot.lane.b32.xlu0 %v670_v51, %s3020_s16 }
 0xa9e   :  { %v673_v52 = vpop.permute.xlu1 %672 }
 0xa9f   :  { %v676_v53 = vsel %vm103_vm3, %v673_v52, %v650_v28 }
 0xaa0   :  { %v770_v54 = vrot.slane %v676_v53, 6 }
 0xaa2   :  { %771 = vrot.lane.b32.xlu1 %v770_v54, %s3020_s16 }
 0xb0f   :  { %v679_v56 = vpop.permute.xlu0 %678 }
 0xb10   :  { %v683_v57 = vsel %vm103_vm3, %v679_v56, %v681_v55  ;;  %v684_v58 = vsel %vm103_vm3, %v679_v56, 0.0 }
 0xb11   :  { %686 = vst.msk [vmem:[#allocation2] sm:$0xc0] %vm685_vm7, %v684_v58  ;;  %v688_v59 = vrot.slane %v683_v57, 6 }
 0xb13   :  { %2581 = vmatmul.mubr.msk.f32.vlgmr.msra.gmra.mxu1 %vm203_vm2, %v688_v59 }
 0xb14   :  { %2595 = vmatpush3.msra.mxu1 %v3142_v2  ;;  %2602 = vmatprep.mubr.msk.f32.mxu1 %vm3028_vm0, %v3027_v0  ;;  %v772_v12 = vpop.permute.xlu1 %771 }
 0xb15   :  { %2596 = vmatprep.subr.mxu1 %v3027_v0 }
 0xb16   :  { %2597 = vmatpush3.msra.mxu1 %v3154_v5 }
 0xb17   :  { %2598 = vmatprep.subr.mxu1 %v3027_v0 }
 0xb18   :  { %2599 = vmatpush3.msra.mxu1 %v3160_v6  ;;  %v1172_v13 = vld [vmem:[#allocation2] sm:$0xff] }
 0xb19   :  { %2600 = vmatprep.subr.mxu1 %v3027_v0 }
 0xb1a   :  { %2601 = vmatpush3.msra.mxu1 %v3168_v7 }
 0xbd3   :  { %v757_v60 = vpop.f32.mrf.mxu1 }
 0xbd4   :  { %v761_v61 = vadd.f32 %v757_v60, %v3201_v11 }
 0xbd5   :  { %v2582_v62 = vpop.f32.mrf.mxu1 }
 0xbd6   :  { %2773 = vtanh.f32 %v761_v61  ;;  %v2399_v1 = vmul.f32 -1.442695, %v761_v61 }
 0xbd8   :  { %2775 = vpow2.f32 %v2399_v1 }
 0xbe3   :  { %v2774_v63 = vpop.eup %2773 }
 0xbe4   :  { %776 = vrot.lane.b32.xlu0 %v2774_v63, %s3029_s1 }
 0xbe5   :  { %v2776_v3 = vpop.eup %2775 }
 0xbe6   :  { %v765_v4 = vadd.f32 1.0, %v2776_v3 }
 0xbe8   :  { %2777 = vrcp.f32 %v765_v4 }
 0xbf5   :  { %v2778_v8 = vpop.eup %2777 }
 0xbf6   :  { %v774_v14 = vmul.f32 %v2778_v8, %v772_v12 }
 0xc56   :  { %v777_v9 = vpop.permute.xlu0 %776 }
 0xc57   :  { %v779_v10 = vmul.f32 %v2778_v8, %v777_v9 }
 0xc59   :  { %781 = vrot.lane.b32.xlu0 %v779_v10, %s3020_s16 }
 0xccb   :  { %v782_v15 = vpop.permute.xlu0 %781 }
 0xccc   :  { %v784_v16 = vadd.f32 %v782_v15, %v774_v14 }
 0xcce   :  { %2779 = vtanh.f32 %v784_v16 }
 0xcdb   :  { %v2780_v17 = vpop.eup %2779 }
 0xcdc   :  { %787 = vrot.lane.b32.xlu1 %v2780_v17, %s3029_s1 }
 0xce0   :  { %792 = vrot.lane.b32.xlu1 %v784_v16, %s3030_s6 }
 0xd4e   :  { %v788_v19 = vpop.permute.xlu1 %787 }
 0xd4f   :  { %v790_v20 = vmul.f32 %v2778_v8, %v788_v19 }
 0xd51   :  { %798 = vrot.lane.b32.xlu0 %v790_v20, %s3020_s16 }
 0xd52   :  { %v793_v21 = vpop.permute.xlu1 %792 }
 0xd53   :  { %v796_v22 = vsel %vm104_vm8, %v793_v21, %v770_v54 }
 0xd54   :  { %v890_v23 = vrot.slane %v796_v22, 6 }
 0xd56   :  { %891 = vrot.lane.b32.xlu1 %v890_v23, %s3020_s16 }
 0xdc3   :  { %v799_v24 = vpop.permute.xlu0 %798 }
 0xdc4   :  { %v802_v25 = vsel %vm104_vm8, %v799_v24, %v688_v59  ;;  %v803_v26 = vsel %vm104_vm8, %v799_v24, 0.0 }
 0xdc5   :  { %804 = vst.msk [vmem:[#allocation2 + $0x8] sm:$0x3] %vm317_vm4, %v803_v26  ;;  %2592 = vmatmul.mubr.msk.f32.vlgmr.msra.gmra.mxu0 %vm203_vm2, %v802_v25  ;;  %v921_v45 = vrot.slane %v802_v25, 6 }
 0xdc6   :  { %2606 = vmatpush3.msra.mxu0 %v3142_v2  ;;  %2613 = vmatprep.mubr.msk.f32.mxu0 %vm3028_vm0, %v3027_v0 }
 0xdc7   :  { %2607 = vmatprep.subr.mxu0 %v3027_v0 }
 0xdc8   :  { %2608 = vmatpush3.msra.mxu0 %v3154_v5 }
 0xdc9   :  { %2609 = vmatprep.subr.mxu0 %v3027_v0 }
 0xdca   :  { %2610 = vmatpush3.msra.mxu0 %v3160_v6 }
 0xdcb   :  { %2611 = vmatprep.subr.mxu0 %v3027_v0 }
 0xdcc   :  { %2612 = vmatpush3.msra.mxu0 %v3168_v7  ;;  %v892_v7 = vpop.permute.xlu1 %891 }
 0xdcd   :  { %2627 = vmatprep.subr.mxu0 %v3027_v0 }
 0xe85   :  { %v874_v27 = vpop.f32.mrf.mxu0 }
 0xe86   :  { %v879_v28 = vrot.slane %v874_v27, 6 }
 0xe87   :  { %v2593_v2 = vpop.f32.mrf.mxu0 }
 0xe88   :  { %v881_v29 = vadd.f32 %v879_v28, %v3201_v11 }
 0xe8a   :  { %2781 = vtanh.f32 %v881_v29  ;;  %v2401_v5 = vmul.f32 -1.442695, %v881_v29 }
 0xe8c   :  { %2783 = vpow2.f32 %v2401_v5 }
 0xe97   :  { %v2782_v31 = vpop.eup %2781 }
 0xe98   :  { %896 = vrot.lane.b32.xlu0 %v2782_v31, %s3029_s1 }
 0xe99   :  { %v2784_v32 = vpop.eup %2783 }
 0xe9a   :  { %v885_v33 = vadd.f32 1.0, %v2784_v32 }
 0xe9c   :  { %2785 = vrcp.f32 %v885_v33 }
 0xea9   :  { %v2786_v6 = vpop.eup %2785 }
 0xeaa   :  { %v894_v36 = vmul.f32 %v2786_v6, %v892_v7  ;;  %v1175_v7 = vld [vmem:[%s3673_s7 + $0x8] sm:$0xff] }
 0xf0a   :  { %v897_v34 = vpop.permute.xlu0 %896 }
 0xf0b   :  { %v899_v35 = vmul.f32 %v2786_v6, %v897_v34  ;;  %v1176_v34 = vld [vmem:[%s3673_s7 + $0x10] sm:$0xff] }
 0xf0d   :  { %901 = vrot.lane.b32.xlu0 %v899_v35, %s3020_s16  ;;  %v3391_v35 = vld [vmem:[#allocation9 + $0x18] sm:$0xff] }
 0xf7f   :  { %v902_v37 = vpop.permute.xlu0 %901 }
 0xf80   :  { %v904_v38 = vadd.f32 %v902_v37, %v894_v36  ;;  %v3397_v36 = vld [vmem:[#allocation9 + $0x10] sm:$0xff]  ;;  %v3400_v37 = vld [vmem:[#allocation9 + $0x8] sm:$0xff] }
 0xf82   :  { %2787 = vtanh.f32 %v904_v38 }
 0xf8f   :  { %v2788_v39 = vpop.eup %2787 }
 0xf90   :  { %907 = vrot.lane.b32.xlu1 %v2788_v39, %s3029_s1  ;;  %v3409_v39 = vld [vmem:[#allocation9] sm:$0xff] }
 0xf94   :  { %912 = vrot.lane.b32.xlu1 %v904_v38, %s3030_s6  ;;  %v1174_v38 = vld [vmem:[%s3673_s7] sm:$0xff] }
0x1002   :  { %v908_v40 = vpop.permute.xlu1 %907 }
0x1003   :  { %v910_v41 = vmul.f32 %v2786_v6, %v908_v40  ;;  %v1177_v6 = vld [vmem:[%s3673_s7 + $0x18] sm:$0xff]  ;;  %v3411_v40 = vld [vmem:[#allocation6 + $0x2] sm:$0x3] }
0x1004   :  { %2616 = vmatprep.subr.mxu1 %v1177_v6 }
0x1005   :  { %918 = vrot.lane.b32.xlu0 %v910_v41, %s3020_s16 }
0x1006   :  { %v913_v42 = vpop.permute.xlu1 %912 }
0x1007   :  { %v916_v43 = vsel %vm104_vm8, %v913_v42, %v890_v23 }
0x1008   :  { %v1012_v44 = vrot.slane %v916_v43, 6  ;;  %v1273_v43 = vld [vmem:[#allocation8 + $0x2] sm:$0x3] }
0x100a   :  { %1013 = vrot.lane.b32.xlu1 %v1012_v44, %s3020_s16 }
0x1077   :  { %v919_v46 = vpop.permute.xlu0 %918 }
0x1078   :  { %v923_v47 = vsel %vm104_vm8, %v919_v46, %v921_v45  ;;  %v924_v48 = vsel %vm104_vm8, %v919_v46, 0.0 }
0x1079   :  { %925 = vst.msk [vmem:[#allocation2 + $0x8] sm:$0xc] %vm439_vm5, %v924_v48  ;;  %v927_v49 = vrot.slane %v923_v47, 2  ;;  %v1043_v14 = vrot.slane %v923_v47, 6 }
0x107b   :  { %2603 = vmatmul.mubr.msk.f32.vlgmr.msra.gmra.mxu1 %vm203_vm2, %v927_v49 }
0x107c   :  { %2624 = vmatprep.mubr.msk.f32.mxu1 %vm203_vm2, %v1172_v13  ;;  %v1014_v61 = vpop.permute.xlu1 %1013  ;;  %2617 = vmatpush3.msra.mxu1 %v1177_v6 }
0x107d   :  { %2618 = vmatprep.subr.mxu1 %v1176_v34 }
0x107e   :  { %2619 = vmatpush3.msra.mxu1 %v1176_v34 }
0x107f   :  { %2620 = vmatprep.subr.mxu1 %v1175_v7 }
0x1080   :  { %2621 = vmatpush3.msra.mxu1 %v1175_v7 }
0x1081   :  { %2622 = vmatprep.subr.mxu1 %v1174_v38 }
0x1082   :  { %2623 = vmatpush3.msra.mxu1 %v1174_v38 }
0x1083   :  { %2638 = vmatprep.subr.mxu1 %v3027_v0 }
0x113b   :  { %v996_v50 = vpop.f32.mrf.mxu1 }
0x113c   :  { %v1001_v51 = vrot.slane %v996_v50, 4  ;;  %v2406_v50 = vld [vmem:[%s3675_s9] ss:$0 sm:$0xff] }
0x113d   :  { %v2604_v52 = vpop.f32.mrf.mxu1 }
0x113e   :  { %v1003_v53 = vadd.f32 %v1001_v51, %v3201_v11 }
0x1140   :  { %2789 = vtanh.f32 %v1003_v53  ;;  %v2403_v55 = vmul.f32 -1.442695, %v1003_v53 }
0x1142   :  { %2791 = vpow2.f32 %v2403_v55 }
0x114d   :  { %v2790_v54 = vpop.eup %2789 }
0x114e   :  { %1018 = vrot.lane.b32.xlu0 %v2790_v54, %s3029_s1 }
0x114f   :  { %v2792_v56 = vpop.eup %2791 }
0x1150   :  { %v1007_v57 = vadd.f32 1.0, %v2792_v56 }
0x1152   :  { %2793 = vrcp.f32 %v1007_v57 }
0x115f   :  { %v2794_v58 = vpop.eup %2793 }
0x1160   :  { %v1016_v62 = vmul.f32 %v2794_v58, %v1014_v61 }
0x11c0   :  { %v1019_v59 = vpop.permute.xlu0 %1018 }
0x11c1   :  { %v1021_v60 = vmul.f32 %v2794_v58, %v1019_v59 }
0x11c3   :  { %1023 = vrot.lane.b32.xlu0 %v1021_v60, %s3020_s16 }
0x1235   :  { %v1024_v63 = vpop.permute.xlu0 %1023 }
0x1236   :  { %v1026_v1 = vadd.f32 %v1024_v63, %v1016_v62 }
0x1238   :  { %2795 = vtanh.f32 %v1026_v1 }
0x1245   :  { %v2796_v3 = vpop.eup %2795 }
0x1246   :  { %1029 = vrot.lane.b32.xlu1 %v2796_v3, %s3029_s1 }
0x124a   :  { %1034 = vrot.lane.b32.xlu1 %v1026_v1, %s3030_s6 }
0x12b8   :  { %v1030_v4 = vpop.permute.xlu1 %1029 }
0x12b9   :  { %v1032_v8 = vmul.f32 %v2794_v58, %v1030_v4 }
0x12bb   :  { %1040 = vrot.lane.b32.xlu0 %v1032_v8, %s3020_s16 }
0x12bc   :  { %v1035_v9 = vpop.permute.xlu1 %1034 }
0x12bd   :  { %v3361_v10 = vsel %vm104_vm8, %v1035_v9, %v1012_v44 }
0x12be   :  { %v1134_v12 = vrot.slane %v3361_v10, 6 }
0x12c0   :  { %1135 = vrot.lane.b32.xlu1 %v1134_v12, %s3020_s16 }
0x132d   :  { %v1041_v15 = vpop.permute.xlu0 %1040 }
0x132e   :  { %v3369_v16 = vsel %vm104_vm8, %v1041_v15, %v1043_v14  ;;  %v1046_v17 = vsel %vm104_vm8, %v1041_v15, 0.0 }
0x132f   :  { %1047 = vst.msk [vmem:[#allocation2 + $0x8] sm:$0x30] %vm562_vm6, %v1046_v17  ;;  %v1049_v19 = vrot.slane %v3369_v16, 4  ;;  %v1165_v44 = vrot.slane %v3369_v16, 6 }
0x1331   :  { %2614 = vmatmul.mubr.msk.f32.vlgmr.msra.gmra.mxu0 %vm203_vm2, %v1049_v19 }
0x1332   :  { %2635 = vmatprep.mubr.msk.f32.mxu0 %vm3028_vm0, %v3027_v0  ;;  %v1136_v31 = vpop.permute.xlu1 %1135  ;;  %2628 = vmatpush3.msra.mxu0 %v3391_v35 }
0x1333   :  { %2629 = vmatprep.subr.mxu0 %v3027_v0 }
0x1334   :  { %2630 = vmatpush3.msra.mxu0 %v3397_v36 }
0x1335   :  { %2631 = vmatprep.subr.mxu0 %v3027_v0 }
0x1336   :  { %2632 = vmatpush3.msra.mxu0 %v3400_v37 }
0x1337   :  { %2633 = vmatprep.subr.mxu0 %v3027_v0 }
0x1338   :  { %2634 = vmatpush3.msra.mxu0 %v3409_v39 }
0x1339   :  { %2636 = vmatmul.mubr.msk.f32.vlgmr.msra.gmra.mxu0 %vm203_vm2, %v3411_v40  ;;  %2649 = vmatprep.subr.mxu0 %v3027_v0 }
0x133a   :  { %2650 = vmatpush3.msra.mxu0 %v3391_v35  ;;  %2657 = vmatprep.mubr.msk.f32.mxu0 %vm3028_vm0, %v3027_v0 }
0x133b   :  { %2651 = vmatprep.subr.mxu0 %v3027_v0 }
0x133c   :  { %2652 = vmatpush3.msra.mxu0 %v3397_v36 }
0x133d   :  { %2653 = vmatprep.subr.mxu0 %v3027_v0 }
0x133e   :  { %2654 = vmatpush3.msra.mxu0 %v3400_v37 }
0x133f   :  { %2655 = vmatprep.subr.mxu0 %v3027_v0 }
0x1340   :  { %2656 = vmatpush3.msra.mxu0 %v3409_v39 }
0x1341   :  { %2671 = vmatprep.subr.mxu0 %v3027_v0 }
0x13f1   :  { %v1118_v20 = vpop.f32.mrf.mxu0 }
0x13f2   :  { %v1123_v21 = vrot.slane %v1118_v20, 2 }
0x13f3   :  { %v2615_v22 = vpop.f32.mrf.mxu0 }
0x13f4   :  { %v1125_v23 = vadd.f32 %v1123_v21, %v3201_v11 }
0x13f6   :  { %2797 = vtanh.f32 %v1125_v23  ;;  %v2405_v25 = vmul.f32 -1.442695, %v1125_v23 }
0x13f8   :  { %2799 = vpow2.f32 %v2405_v25 }
0x13f9   :  { %v1343_v49 = vpop.f32.mrf.mxu0 }
0x13fb   :  { %v2637_v13 = vpop.f32.mrf.mxu0 }
0x1403   :  { %v2798_v24 = vpop.eup %2797 }
0x1404   :  { %1140 = vrot.lane.b32.xlu0 %v2798_v24, %s3029_s1 }
0x1405   :  { %v2800_v26 = vpop.eup %2799 }
0x1406   :  { %v1129_v27 = vadd.f32 1.0, %v2800_v26 }
0x1408   :  { %2801 = vrcp.f32 %v1129_v27 }
0x1415   :  { %v2802_v28 = vpop.eup %2801 }
0x1416   :  { %v1138_v5 = vmul.f32 %v2802_v28, %v1136_v31 }
0x1476   :  { %v1141_v2 = vpop.permute.xlu0 %1140 }
0x1477   :  { %v1143_v29 = vmul.f32 %v2802_v28, %v1141_v2 }
0x1479   :  { %1145 = vrot.lane.b32.xlu0 %v1143_v29, %s3020_s16 }
0x14eb   :  { %v1146_v32 = vpop.permute.xlu0 %1145 }
0x14ec   :  { %v3381_v33 = vadd.f32 %v1146_v32, %v1138_v5 }
0x14ee   :  { %2803 = vtanh.f32 %v3381_v33 }
0x14fb   :  { %v2804_v11 = vpop.eup %2803 }
0x14fc   :  { %1151 = vrot.lane.b32.xlu1 %v2804_v11, %s3029_s1 }
0x156e   :  { %v1152_v41 = vpop.permute.xlu1 %1151 }
0x156f   :  { %v1154_v42 = vmul.f32 %v2802_v28, %v1152_v41 }
0x1571   :  { %1162 = vrot.lane.b32.xlu0 %v1154_v42, %s3020_s16 }
0x1575   :  { %1356 = vrot.lane.b32.xlu0 %v1273_v43, %s3020_s16 }
0x15e3   :  { %v1163_v45 = vpop.permute.xlu0 %1162 }
0x15e4   :  { %v1167_v46 = vsel %vm104_vm8, %v1163_v45, %v1165_v44  ;;  %v1168_v47 = vsel %vm104_vm8, %v1163_v45, 0.0 }
0x15e5   :  { %1169 = vst.msk [vmem:[#allocation2 + $0x8] sm:$0xc0] %vm685_vm7, %v1168_v47  ;;  %1170 = vst.msk [vmem:[#allocation12 - $0x6] sm:$0xc0] %vm685_vm7, %v1167_v46 }
0x15e7   :  { %v1357_v63 = vpop.permute.xlu0 %1356 }
0x15ec   :  { %v1173_v48 = vld [vmem:[#allocation2 + $0x8] sm:$0xff] }
0x15ed   :  { %2625 = vmatmul.mubr.msk.f32.vlgmr.msra.gmra.mxu1 %vm203_vm2, %v1173_v48 }
0x15ee   :  { %2639 = vmatpush3.msra.mxu1 %v3391_v35  ;;  %2646 = vmatprep.mubr.msk.f32.mxu1 %vm3028_vm0, %v3027_v0 }
0x15ef   :  { %2640 = vmatprep.subr.mxu1 %v3027_v0 }
0x15f0   :  { %2641 = vmatpush3.msra.mxu1 %v3397_v36 }
0x15f1   :  { %2642 = vmatprep.subr.mxu1 %v3027_v0 }
0x15f2   :  { %2643 = vmatpush3.msra.mxu1 %v3400_v37 }
0x15f3   :  { %2644 = vmatprep.subr.mxu1 %v3027_v0 }
0x15f4   :  { %2645 = vmatpush3.msra.mxu1 %v3409_v39 }
0x15f5   :  { %2660 = vmatprep.subr.mxu1 %v3027_v0 }
0x16ad   :  { %v2626_v51 = vpop.f32.mrf.mxu1 }
0x16ae   :  { %v3451_v52 = vadd.f32 %v2626_v51, %v2406_v50 }
0x16af   :  { %v1261_v53 = vpop.f32.mrf.mxu1 }
0x16b0   :  { %v3453_v54 = vadd.f32 %v2406_v50, %v1261_v53 }
0x16b2   :  { %v1347_v55 = vadd.f32 %v1343_v49, %v3453_v54 }
0x16b4   :  { %2805 = vtanh.f32 %v1347_v55  ;;  %v2410_v57 = vmul.f32 -1.442695, %v1347_v55 }
0x16b6   :  { %2807 = vpow2.f32 %v2410_v57 }
0x16c1   :  { %v2806_v56 = vpop.eup %2805 }
0x16c2   :  { %1361 = vrot.lane.b32.xlu1 %v2806_v56, %s3029_s1 }
0x16c3   :  { %v2808_v58 = vpop.eup %2807 }
0x16c4   :  { %v1351_v59 = vadd.f32 1.0, %v2808_v58 }
0x16c6   :  { %2809 = vrcp.f32 %v1351_v59 }
0x16d3   :  { %v2810_v60 = vpop.eup %2809 }
0x16d4   :  { %v1359_v1 = vmul.f32 %v2810_v60, %v1357_v63 }
0x1734   :  { %v1362_v61 = vpop.permute.xlu1 %1361 }
0x1735   :  { %v1364_v62 = vmul.f32 %v2810_v60, %v1362_v61 }
0x1737   :  { %1366 = vrot.lane.b32.xlu1 %v1364_v62, %s3020_s16 }
0x17a9   :  { %v1367_v3 = vpop.permute.xlu1 %1366 }
0x17aa   :  { %v1369_v4 = vadd.f32 %v1367_v3, %v1359_v1 }
0x17ac   :  { %2811 = vtanh.f32 %v1369_v4 }
0x17b9   :  { %v2812_v8 = vpop.eup %2811 }
0x17ba   :  { %1372 = vrot.lane.b32.xlu0 %v2812_v8, %s3029_s1 }
0x17be   :  { %1377 = vrot.lane.b32.xlu0 %v1369_v4, %s3030_s6 }
0x182c   :  { %v1373_v9 = vpop.permute.xlu0 %1372 }
0x182d   :  { %v1375_v14 = vmul.f32 %v2810_v60, %v1373_v9 }
0x182f   :  { %1382 = vrot.lane.b32.xlu1 %v1375_v14, %s3020_s16 }
0x1830   :  { %v1378_v15 = vpop.permute.xlu0 %1377 }
0x1831   :  { %v1380_v16 = vsel %vm103_vm3, %v1378_v15, %v1273_v43 }
0x1832   :  { %v1473_v17 = vrot.slane %v1380_v16, 6 }
0x1834   :  { %1474 = vrot.lane.b32.xlu0 %v1473_v17, %s3020_s16 }
0x18a1   :  { %v1383_v19 = vpop.permute.xlu1 %1382 }
0x18a2   :  { %v1385_v20 = vsel %vm103_vm3, %v1383_v19, %v3411_v40  ;;  %v1386_v21 = vsel %vm103_vm3, %v1383_v19, 0.0 }
0x18a3   :  { %1387 = vst.msk [vmem:[#allocation2] sm:$0x3] %vm317_vm4, %v1386_v21  ;;  %2647 = vmatmul.mubr.msk.f32.vlgmr.msra.gmra.mxu1 %vm203_vm2, %v1385_v20  ;;  %v1504_v44 = vrot.slane %v1385_v20, 6 }
0x18a4   :  { %2661 = vmatpush3.msra.mxu1 %v3391_v35  ;;  %2668 = vmatprep.mubr.msk.f32.mxu1 %vm3028_vm0, %v3027_v0 }
0x18a5   :  { %2662 = vmatprep.subr.mxu1 %v3027_v0 }
0x18a6   :  { %2663 = vmatpush3.msra.mxu1 %v3397_v36  ;;  %v1475_v32 = vpop.permute.xlu0 %1474 }
0x18a7   :  { %2664 = vmatprep.subr.mxu1 %v3027_v0 }
0x18a8   :  { %2665 = vmatpush3.msra.mxu1 %v3400_v37 }
0x18a9   :  { %2666 = vmatprep.subr.mxu1 %v3027_v0 }
0x18aa   :  { %2667 = vmatpush3.msra.mxu1 %v3409_v39 }
0x18ab   :  { %2682 = vmatprep.subr.mxu1 %v3027_v0 }
0x1963   :  { %v1457_v22 = vpop.f32.mrf.mxu1 }
0x1964   :  { %v1462_v23 = vrot.slane %v1457_v22, 6 }
0x1965   :  { %v2648_v24 = vpop.f32.mrf.mxu1 }
0x1966   :  { %v1464_v25 = vadd.f32 %v1462_v23, %v3453_v54 }
0x1968   :  { %2813 = vtanh.f32 %v1464_v25  ;;  %v2412_v27 = vmul.f32 -1.442695, %v1464_v25 }
0x196a   :  { %2815 = vpow2.f32 %v2412_v27 }
0x1975   :  { %v2814_v26 = vpop.eup %2813 }
0x1976   :  { %1479 = vrot.lane.b32.xlu1 %v2814_v26, %s3029_s1 }
0x1977   :  { %v2816_v28 = vpop.eup %2815 }
0x1978   :  { %v1468_v2 = vadd.f32 1.0, %v2816_v28 }
0x197a   :  { %2817 = vrcp.f32 %v1468_v2 }
0x1987   :  { %v2818_v29 = vpop.eup %2817 }
0x1988   :  { %v1477_v11 = vmul.f32 %v2818_v29, %v1475_v32 }
0x19e8   :  { %v1480_v31 = vpop.permute.xlu1 %1479 }
0x19e9   :  { %v1482_v5 = vmul.f32 %v2818_v29, %v1480_v31 }
0x19eb   :  { %1484 = vrot.lane.b32.xlu1 %v1482_v5, %s3020_s16 }
0x1a5d   :  { %v1485_v6 = vpop.permute.xlu1 %1484 }
0x1a5e   :  { %v1487_v34 = vadd.f32 %v1485_v6, %v1477_v11 }
0x1a60   :  { %2819 = vtanh.f32 %v1487_v34 }
0x1a6d   :  { %v2820_v7 = vpop.eup %2819 }
0x1a6e   :  { %1490 = vrot.lane.b32.xlu0 %v2820_v7, %s3029_s1 }
0x1a72   :  { %1495 = vrot.lane.b32.xlu0 %v1487_v34, %s3030_s6 }
0x1ae0   :  { %v1491_v38 = vpop.permute.xlu0 %1490 }
0x1ae1   :  { %v1493_v40 = vmul.f32 %v2818_v29, %v1491_v38 }
0x1ae3   :  { %1501 = vrot.lane.b32.xlu1 %v1493_v40, %s3020_s16 }
0x1ae4   :  { %v1496_v41 = vpop.permute.xlu0 %1495 }
0x1ae5   :  { %v1499_v42 = vsel %vm103_vm3, %v1496_v41, %v1473_v17 }
0x1ae6   :  { %v1595_v43 = vrot.slane %v1499_v42, 6 }
0x1ae8   :  { %1596 = vrot.lane.b32.xlu0 %v1595_v43, %s3020_s16 }
0x1b55   :  { %v1502_v45 = vpop.permute.xlu1 %1501 }
0x1b56   :  { %v1506_v46 = vsel %vm103_vm3, %v1502_v45, %v1504_v44  ;;  %v1507_v47 = vsel %vm103_vm3, %v1502_v45, 0.0 }
0x1b57   :  { %1508 = vst.msk [vmem:[#allocation2] sm:$0xc] %vm439_vm5, %v1507_v47  ;;  %v1510_v48 = vrot.slane %v1506_v46, 2  ;;  %v1626_v16 = vrot.slane %v1506_v46, 6 }
0x1b59   :  { %2658 = vmatmul.mubr.msk.f32.vlgmr.msra.gmra.mxu0 %vm203_vm2, %v1510_v48 }
0x1b5a   :  { %2672 = vmatpush3.msra.mxu0 %v3391_v35  ;;  %2679 = vmatprep.mubr.msk.f32.mxu0 %vm3028_vm0, %v3027_v0  ;;  %v1597_v61 = vpop.permute.xlu0 %1596 }
0x1b5b   :  { %2673 = vmatprep.subr.mxu0 %v3027_v0 }
0x1b5c   :  { %2674 = vmatpush3.msra.mxu0 %v3397_v36 }
0x1b5d   :  { %2675 = vmatprep.subr.mxu0 %v3027_v0 }
0x1b5e   :  { %2676 = vmatpush3.msra.mxu0 %v3400_v37 }
0x1b5f   :  { %2677 = vmatprep.subr.mxu0 %v3027_v0 }
0x1b60   :  { %2678 = vmatpush3.msra.mxu0 %v3409_v39 }
0x1b61   :  { %2693 = vmatprep.subr.mxu0 %v3027_v0 }
0x1c19   :  { %v1579_v49 = vpop.f32.mrf.mxu0 }
0x1c1a   :  { %v1584_v13 = vrot.slane %v1579_v49, 4 }
0x1c1b   :  { %v2659_v50 = vpop.f32.mrf.mxu0 }
0x1c1c   :  { %v1586_v51 = vadd.f32 %v1584_v13, %v3453_v54 }
0x1c1e   :  { %2821 = vtanh.f32 %v1586_v51  ;;  %v2414_v55 = vmul.f32 -1.442695, %v1586_v51 }
0x1c20   :  { %2823 = vpow2.f32 %v2414_v55 }
0x1c2b   :  { %v2822_v53 = vpop.eup %2821 }
0x1c2c   :  { %1601 = vrot.lane.b32.xlu1 %v2822_v53, %s3029_s1 }
0x1c2d   :  { %v2824_v56 = vpop.eup %2823 }
0x1c2e   :  { %v1590_v57 = vadd.f32 1.0, %v2824_v56 }
0x1c30   :  { %2825 = vrcp.f32 %v1590_v57 }
0x1c3d   :  { %v2826_v58 = vpop.eup %2825 }
0x1c3e   :  { %v1599_v62 = vmul.f32 %v2826_v58, %v1597_v61 }
0x1c9e   :  { %v1602_v59 = vpop.permute.xlu1 %1601 }
0x1c9f   :  { %v1604_v60 = vmul.f32 %v2826_v58, %v1602_v59 }
0x1ca1   :  { %1606 = vrot.lane.b32.xlu1 %v1604_v60, %s3020_s16 }
0x1d13   :  { %v1607_v63 = vpop.permute.xlu1 %1606 }
0x1d14   :  { %v1609_v1 = vadd.f32 %v1607_v63, %v1599_v62 }
0x1d16   :  { %2827 = vtanh.f32 %v1609_v1 }
0x1d23   :  { %v2828_v3 = vpop.eup %2827 }
0x1d24   :  { %1612 = vrot.lane.b32.xlu0 %v2828_v3, %s3029_s1 }
0x1d28   :  { %1617 = vrot.lane.b32.xlu0 %v1609_v1, %s3030_s6 }
0x1d96   :  { %v1613_v4 = vpop.permute.xlu0 %1612 }
0x1d97   :  { %v1615_v8 = vmul.f32 %v2826_v58, %v1613_v4 }
0x1d99   :  { %1623 = vrot.lane.b32.xlu1 %v1615_v8, %s3020_s16 }
0x1d9a   :  { %v1618_v9 = vpop.permute.xlu0 %1617 }
0x1d9b   :  { %v1621_v14 = vsel %vm103_vm3, %v1618_v9, %v1595_v43 }
0x1d9c   :  { %v1717_v15 = vrot.slane %v1621_v14, 6 }
0x1d9e   :  { %1718 = vrot.lane.b32.xlu0 %v1717_v15, %s3020_s16 }
0x1e0b   :  { %v1624_v17 = vpop.permute.xlu1 %1623 }
0x1e0c   :  { %v1628_v19 = vsel %vm103_vm3, %v1624_v17, %v1626_v16  ;;  %v1629_v20 = vsel %vm103_vm3, %v1624_v17, 0.0 }
0x1e0d   :  { %1630 = vst.msk [vmem:[#allocation2] sm:$0x30] %vm562_vm6, %v1629_v20  ;;  %v1632_v21 = vrot.slane %v1628_v19, 4  ;;  %v1748_v43 = vrot.slane %v1628_v19, 6 }
0x1e0f   :  { %2669 = vmatmul.mubr.msk.f32.vlgmr.msra.gmra.mxu1 %vm203_vm2, %v1632_v21 }
0x1e10   :  { %2683 = vmatpush3.msra.mxu1 %v3391_v35  ;;  %2690 = vmatprep.mubr.msk.f32.mxu1 %vm3028_vm0, %v3027_v0  ;;  %v1719_v32 = vpop.permute.xlu0 %1718 }
0x1e11   :  { %2684 = vmatprep.subr.mxu1 %v3027_v0 }
0x1e12   :  { %2685 = vmatpush3.msra.mxu1 %v3397_v36 }
0x1e13   :  { %2686 = vmatprep.subr.mxu1 %v3027_v0 }
0x1e14   :  { %2687 = vmatpush3.msra.mxu1 %v3400_v37 }
0x1e15   :  { %2688 = vmatprep.subr.mxu1 %v3027_v0 }
0x1e16   :  { %2689 = vmatpush3.msra.mxu1 %v3409_v39 }
0x1e17   :  { %2704 = vmatprep.subr.mxu1 %v3027_v0 }
0x1ecf   :  { %v1701_v22 = vpop.f32.mrf.mxu1 }
0x1ed0   :  { %v1706_v23 = vrot.slane %v1701_v22, 2 }
0x1ed1   :  { %v2670_v24 = vpop.f32.mrf.mxu1 }
0x1ed2   :  { %v1708_v25 = vadd.f32 %v1706_v23, %v3453_v54 }
0x1ed4   :  { %2829 = vtanh.f32 %v1708_v25  ;;  %v2416_v27 = vmul.f32 -1.442695, %v1708_v25 }
0x1ed6   :  { %2831 = vpow2.f32 %v2416_v27 }
0x1ee1   :  { %v2830_v26 = vpop.eup %2829 }
0x1ee2   :  { %1723 = vrot.lane.b32.xlu1 %v2830_v26, %s3029_s1 }
0x1ee3   :  { %v2832_v28 = vpop.eup %2831 }
0x1ee4   :  { %v1712_v2 = vadd.f32 1.0, %v2832_v28 }
0x1ee6   :  { %2833 = vrcp.f32 %v1712_v2 }
0x1ef3   :  { %v2834_v29 = vpop.eup %2833 }
0x1ef4   :  { %v1721_v11 = vmul.f32 %v2834_v29, %v1719_v32 }
0x1f54   :  { %v1724_v31 = vpop.permute.xlu1 %1723 }
0x1f55   :  { %v1726_v5 = vmul.f32 %v2834_v29, %v1724_v31 }
0x1f57   :  { %1728 = vrot.lane.b32.xlu1 %v1726_v5, %s3020_s16 }
0x1fc9   :  { %v1729_v6 = vpop.permute.xlu1 %1728 }
0x1fca   :  { %v1731_v34 = vadd.f32 %v1729_v6, %v1721_v11 }
0x1fcc   :  { %2835 = vtanh.f32 %v1731_v34 }
0x1fd9   :  { %v2836_v54 = vpop.eup %2835 }
0x1fda   :  { %1734 = vrot.lane.b32.xlu0 %v2836_v54, %s3029_s1 }
0x1fde   :  { %1739 = vrot.lane.b32.xlu0 %v1731_v34, %s3030_s6 }
0x204c   :  { %v1735_v7 = vpop.permute.xlu0 %1734 }
0x204d   :  { %v1737_v38 = vmul.f32 %v2834_v29, %v1735_v7 }
0x204f   :  { %1745 = vrot.lane.b32.xlu1 %v1737_v38, %s3020_s16 }
0x2050   :  { %v1740_v40 = vpop.permute.xlu0 %1739 }
0x2051   :  { %v1743_v41 = vsel %vm103_vm3, %v1740_v40, %v1717_v15 }
0x2052   :  { %v1836_v42 = vrot.slane %v1743_v41, 6 }
0x2054   :  { %1837 = vrot.lane.b32.xlu0 %v1836_v42, %s3020_s16 }
0x20c1   :  { %v1746_v44 = vpop.permute.xlu1 %1745 }
0x20c2   :  { %v1750_v45 = vsel %vm103_vm3, %v1746_v44, %v1748_v43  ;;  %v1751_v46 = vsel %vm103_vm3, %v1746_v44, 0.0 }
0x20c3   :  { %1752 = vst.msk [vmem:[#allocation2] sm:$0xc0] %vm685_vm7, %v1751_v46  ;;  %v1754_v47 = vrot.slane %v1750_v45, 6 }
0x20c5   :  { %2680 = vmatmul.mubr.msk.f32.vlgmr.msra.gmra.mxu0 %vm203_vm2, %v1754_v47 }
0x20c6   :  { %2694 = vmatpush3.msra.mxu0 %v3391_v35  ;;  %2701 = vmatprep.mubr.msk.f32.mxu0 %vm3028_vm0, %v3027_v0  ;;  %v1838_v58 = vpop.permute.xlu0 %1837 }
0x20c7   :  { %2695 = vmatprep.subr.mxu0 %v3027_v0 }
0x20c8   :  { %2696 = vmatpush3.msra.mxu0 %v3397_v36 }
0x20c9   :  { %2697 = vmatprep.subr.mxu0 %v3027_v0 }
0x20ca   :  { %2698 = vmatpush3.msra.mxu0 %v3400_v37  ;;  %v2240_v7 = vld [vmem:[#allocation2] sm:$0xff] }
0x20cb   :  { %2699 = vmatprep.subr.mxu0 %v3027_v0 }
0x20cc   :  { %2700 = vmatpush3.msra.mxu0 %v3409_v39 }
0x2185   :  { %v1823_v30 = vpop.f32.mrf.mxu0 }
0x2186   :  { %v1827_v48 = vadd.f32 %v1823_v30, %v3451_v52 }
0x2187   :  { %v2681_v49 = vpop.f32.mrf.mxu0 }
0x2188   :  { %2837 = vtanh.f32 %v1827_v48  ;;  %v2418_v50 = vmul.f32 -1.442695, %v1827_v48 }
0x218a   :  { %2839 = vpow2.f32 %v2418_v50 }
0x2195   :  { %v2838_v13 = vpop.eup %2837 }
0x2196   :  { %1842 = vrot.lane.b32.xlu1 %v2838_v13, %s3029_s1 }
0x2197   :  { %v2840_v51 = vpop.eup %2839 }
0x2198   :  { %v1831_v53 = vadd.f32 1.0, %v2840_v51 }
0x219a   :  { %2841 = vrcp.f32 %v1831_v53 }
0x21a7   :  { %v2842_v55 = vpop.eup %2841 }
0x21a8   :  { %v1840_v59 = vmul.f32 %v2842_v55, %v1838_v58 }
0x2208   :  { %v1843_v56 = vpop.permute.xlu1 %1842 }
0x2209   :  { %v1845_v57 = vmul.f32 %v2842_v55, %v1843_v56 }
0x220b   :  { %1847 = vrot.lane.b32.xlu1 %v1845_v57, %s3020_s16 }
0x227d   :  { %v1848_v60 = vpop.permute.xlu1 %1847 }
0x227e   :  { %v1850_v61 = vadd.f32 %v1848_v60, %v1840_v59 }
0x2280   :  { %2843 = vtanh.f32 %v1850_v61 }
0x228d   :  { %v2844_v62 = vpop.eup %2843 }
0x228e   :  { %1853 = vrot.lane.b32.xlu0 %v2844_v62, %s3029_s1 }
0x2292   :  { %1858 = vrot.lane.b32.xlu0 %v1850_v61, %s3030_s6 }
0x2300   :  { %v1854_v63 = vpop.permute.xlu0 %1853 }
0x2301   :  { %v1856_v1 = vmul.f32 %v2842_v55, %v1854_v63 }
0x2303   :  { %1864 = vrot.lane.b32.xlu1 %v1856_v1, %s3020_s16 }
0x2304   :  { %v1859_v3 = vpop.permute.xlu0 %1858 }
0x2305   :  { %v1862_v4 = vsel %vm104_vm8, %v1859_v3, %v1836_v42 }
0x2306   :  { %v1956_v8 = vrot.slane %v1862_v4, 6 }
0x2308   :  { %1957 = vrot.lane.b32.xlu0 %v1956_v8, %s3020_s16 }
0x2375   :  { %v1865_v9 = vpop.permute.xlu1 %1864 }
0x2376   :  { %v1868_v14 = vsel %vm104_vm8, %v1865_v9, %v1754_v47  ;;  %v1869_v15 = vsel %vm104_vm8, %v1865_v9, 0.0 }
0x2377   :  { %1870 = vst.msk [vmem:[#allocation2 + $0x8] sm:$0x3] %vm317_vm4, %v1869_v15  ;;  %2691 = vmatmul.mubr.msk.f32.vlgmr.msra.gmra.mxu1 %vm203_vm2, %v1868_v14  ;;  %v1987_v32 = vrot.slane %v1868_v14, 6 }
0x2378   :  { %2705 = vmatpush3.msra.mxu1 %v3391_v35  ;;  %2712 = vmatprep.mubr.msk.f32.mxu1 %vm3028_vm0, %v3027_v0 }
0x2379   :  { %2706 = vmatprep.subr.mxu1 %v3027_v0 }
0x237a   :  { %2707 = vmatpush3.msra.mxu1 %v3397_v36 }
0x237b   :  { %2708 = vmatprep.subr.mxu1 %v3027_v0 }
0x237c   :  { %2709 = vmatpush3.msra.mxu1 %v3400_v37 }
0x237d   :  { %2710 = vmatprep.subr.mxu1 %v3027_v0  ;;  %v1958_v0 = vpop.permute.xlu0 %1957 }
0x237e   :  { %2711 = vmatpush3.msra.mxu1 %v3409_v39 }
0x2437   :  { %v1940_v16 = vpop.f32.mrf.mxu1 }
0x2438   :  { %v1945_v17 = vrot.slane %v1940_v16, 6 }
0x2439   :  { %v2692_v19 = vpop.f32.mrf.mxu1 }
0x243a   :  { %v1947_v35 = vadd.f32 %v1945_v17, %v3451_v52 }
0x243c   :  { %2845 = vtanh.f32 %v1947_v35  ;;  %v2420_v21 = vmul.f32 -1.442695, %v1947_v35 }
0x243e   :  { %2847 = vpow2.f32 %v2420_v21 }
0x2449   :  { %v2846_v20 = vpop.eup %2845 }
0x244a   :  { %1962 = vrot.lane.b32.xlu1 %v2846_v20, %s3029_s1 }
0x244b   :  { %v2848_v36 = vpop.eup %2847 }
0x244c   :  { %v1951_v22 = vadd.f32 1.0, %v2848_v36 }
0x244e   :  { %2849 = vrcp.f32 %v1951_v22 }
0x245b   :  { %v2850_v23 = vpop.eup %2849 }
0x245c   :  { %v1960_v39 = vmul.f32 %v2850_v23, %v1958_v0  ;;  %v2243_v0 = vld [vmem:[%s3676_s10 + $0x8] sm:$0xff] }
0x24bc   :  { %v1963_v37 = vpop.permute.xlu1 %1962 }
0x24bd   :  { %v1965_v24 = vmul.f32 %v2850_v23, %v1963_v37  ;;  %v2245_v37 = vld [vmem:[%s3676_s10 + $0x18] sm:$0xff] }
0x24be   :  { %2715 = vmatprep.subr.mxu0 %v2245_v37 }
0x24bf   :  { %1967 = vrot.lane.b32.xlu1 %v1965_v24, %s3020_s16  ;;  %v2244_v24 = vld [vmem:[%s3676_s10 + $0x10] sm:$0xff] }
0x2531   :  { %v1968_v25 = vpop.permute.xlu1 %1967 }
0x2532   :  { %v1970_v26 = vadd.f32 %v1968_v25, %v1960_v39 }
0x2534   :  { %2851 = vtanh.f32 %v1970_v26 }
0x2541   :  { %v2852_v27 = vpop.eup %2851 }
0x2542   :  { %1973 = vrot.lane.b32.xlu0 %v2852_v27, %s3029_s1 }
0x2546   :  { %1978 = vrot.lane.b32.xlu0 %v1970_v26, %s3030_s6 }
0x25b4   :  { %v1974_v28 = vpop.permute.xlu0 %1973 }
0x25b5   :  { %v1976_v2 = vmul.f32 %v2850_v23, %v1974_v28 }
0x25b7   :  { %1984 = vrot.lane.b32.xlu1 %v1976_v2, %s3020_s16 }
0x25b8   :  { %v1979_v29 = vpop.permute.xlu0 %1978 }
0x25b9   :  { %v1982_v31 = vsel %vm104_vm8, %v1979_v29, %v1956_v8 }
0x25ba   :  { %v2078_v5 = vrot.slane %v1982_v31, 6 }
0x25bc   :  { %2079 = vrot.lane.b32.xlu0 %v2078_v5, %s3020_s16 }
0x2629   :  { %v1985_v11 = vpop.permute.xlu1 %1984 }
0x262a   :  { %v1989_v6 = vsel %vm104_vm8, %v1985_v11, %v1987_v32  ;;  %v1990_v34 = vsel %vm104_vm8, %v1985_v11, 0.0 }
0x262b   :  { %1991 = vst.msk [vmem:[#allocation2 + $0x8] sm:$0xc] %vm439_vm5, %v1990_v34  ;;  %v1993_v54 = vrot.slane %v1989_v6, 2  ;;  %v2109_v60 = vrot.slane %v1989_v6, 6 }
0x262d   :  { %2702 = vmatmul.mubr.msk.f32.vlgmr.msra.gmra.mxu0 %vm203_vm2, %v1993_v54 }
0x262e   :  { %2723 = vmatprep.mubr.msk.f32.mxu0 %vm203_vm2, %v2240_v7  ;;  %v2080_v49 = vpop.permute.xlu0 %2079  ;;  %2716 = vmatpush3.msra.mxu0 %v2245_v37 }
0x262f   :  { %2717 = vmatprep.subr.mxu0 %v2244_v24 }
0x2630   :  { %2718 = vmatpush3.msra.mxu0 %v2244_v24 }
0x2631   :  { %2719 = vmatprep.subr.mxu0 %v2243_v0 }
0x2632   :  { %2720 = vmatpush3.msra.mxu0 %v2243_v0 }
0x26ed   :  { %v2062_v38 = vpop.f32.mrf.mxu0 }
0x26ee   :  { %v2067_v40 = vrot.slane %v2062_v38, 4 }
0x26ef   :  { %v2703_v41 = vpop.f32.mrf.mxu0 }
0x26f0   :  { %v2069_v42 = vadd.f32 %v2067_v40, %v3451_v52 }
0x26f2   :  { %2853 = vtanh.f32 %v2069_v42  ;;  %v2422_v44 = vmul.f32 -1.442695, %v2069_v42 }
0x26f4   :  { %2855 = vpow2.f32 %v2422_v44 }
0x26ff   :  { %v2854_v43 = vpop.eup %2853 }
0x2700   :  { %2084 = vrot.lane.b32.xlu1 %v2854_v43, %s3029_s1 }
0x2701   :  { %v2856_v45 = vpop.eup %2855 }
0x2702   :  { %v2073_v46 = vadd.f32 1.0, %v2856_v45 }
0x2704   :  { %2857 = vrcp.f32 %v2073_v46 }
0x2711   :  { %v2858_v47 = vpop.eup %2857 }
0x2712   :  { %v2082_v13 = vmul.f32 %v2858_v47, %v2080_v49 }
0x2772   :  { %v2085_v30 = vpop.permute.xlu1 %2084 }
0x2773   :  { %v2087_v48 = vmul.f32 %v2858_v47, %v2085_v30 }
0x2775   :  { %2089 = vrot.lane.b32.xlu1 %v2087_v48, %s3020_s16 }
0x27e7   :  { %v2090_v50 = vpop.permute.xlu1 %2089 }
0x27e8   :  { %v2092_v51 = vadd.f32 %v2090_v50, %v2082_v13 }
0x27ea   :  { %2859 = vtanh.f32 %v2092_v51 }
0x27f7   :  { %v2860_v53 = vpop.eup %2859 }
0x27f8   :  { %2095 = vrot.lane.b32.xlu0 %v2860_v53, %s3029_s1 }
0x27fc   :  { %2100 = vrot.lane.b32.xlu0 %v2092_v51, %s3030_s6 }
0x286a   :  { %v2096_v55 = vpop.permute.xlu0 %2095 }
0x286b   :  { %v2098_v56 = vmul.f32 %v2858_v47, %v2096_v55 }
0x286d   :  { %2106 = vrot.lane.b32.xlu1 %v2098_v56, %s3020_s16 }
0x286e   :  { %v2101_v57 = vpop.permute.xlu0 %2100 }
0x286f   :  { %v2104_v58 = vsel %vm104_vm8, %v2101_v57, %v2078_v5 }
0x2870   :  { %v2200_v59 = vrot.slane %v2104_v58, 6 }
0x2872   :  { %2201 = vrot.lane.b32.xlu0 %v2200_v59, %s3020_s16 }
0x28df   :  { %v2107_v61 = vpop.permute.xlu1 %2106 }
0x28e0   :  { %v2111_v62 = vsel %vm104_vm8, %v2107_v61, %v2109_v60  ;;  %v2112_v63 = vsel %vm104_vm8, %v2107_v61, 0.0 }
0x28e1   :  { %2113 = vst.msk [vmem:[#allocation2 + $0x8] sm:$0x30] %vm562_vm6, %v2112_v63  ;;  %v2115_v1 = vrot.slane %v2111_v62, 4  ;;  %v2231_v28 = vrot.slane %v2111_v62, 6 }
0x28e3   :  { %2713 = vmatmul.mubr.msk.f32.vlgmr.msra.gmra.mxu1 %vm203_vm2, %v2115_v1 }
0x28e4   :  { %v2202_v21 = vpop.permute.xlu0 %2201 }
0x29a3   :  { %v2184_v3 = vpop.f32.mrf.mxu1 }
0x29a4   :  { %v2189_v4 = vrot.slane %v2184_v3, 2 }
0x29a5   :  { %v2714_v8 = vpop.f32.mrf.mxu1 }
0x29a6   :  { %v2191_v9 = vadd.f32 %v2189_v4, %v3451_v52 }
0x29a8   :  { %2861 = vtanh.f32 %v2191_v9  ;;  %v2424_v15 = vmul.f32 -1.442695, %v2191_v9 }
0x29aa   :  { %2863 = vpow2.f32 %v2424_v15 }
0x29b5   :  { %v2862_v14 = vpop.eup %2861 }
0x29b6   :  { %2206 = vrot.lane.b32.xlu1 %v2862_v14, %s3029_s1 }
0x29b7   :  { %v2864_v16 = vpop.eup %2863 }
0x29b8   :  { %v2195_v17 = vadd.f32 1.0, %v2864_v16 }
0x29ba   :  { %2865 = vrcp.f32 %v2195_v17 }
0x29c7   :  { %v2866_v19 = vpop.eup %2865 }
0x29c8   :  { %v2204_v36 = vmul.f32 %v2866_v19, %v2202_v21 }
0x2a28   :  { %v2207_v35 = vpop.permute.xlu1 %2206 }
0x2a29   :  { %v2209_v20 = vmul.f32 %v2866_v19, %v2207_v35 }
0x2a2b   :  { %2211 = vrot.lane.b32.xlu1 %v2209_v20, %s3020_s16 }
0x2a9d   :  { %v2212_v22 = vpop.permute.xlu1 %2211 }
0x2a9e   :  { %v2214_v23 = vadd.f32 %v2212_v22, %v2204_v36 }
0x2aa0   :  { %2867 = vtanh.f32 %v2214_v23 }
0x2aad   :  { %v2868_v52 = vpop.eup %2867 }
0x2aae   :  { %2217 = vrot.lane.b32.xlu0 %v2868_v52, %s3029_s1 }
0x2ab2   :  { %1156 = vrot.lane.b32.xlu0 %v3381_v33, %s3030_s6  ;;  %v2242_v33 = vld [vmem:[%s3676_s10] sm:$0xff]  ;;  %s3031_s10 = smov [#allocation12]  }
0x2ab3   :  { %2721 = vmatprep.subr.mxu0 %v2242_v33  ;;  %s2354_s5 = sshll.u32 %s3031_s10, 4  ;;  %s2355_s5 = int_to_ptr.vmem [resolvable:$true] %s2354_s5 }
0x2ab4   :  { %2722 = vmatpush3.msra.mxu0 %v2242_v33  ;;  %s2949_s18 = scalar_lea.vmem %s2355_s5, 64  ;;  %p2954_p7 = scmp.lt.s32.totalorder %s2355_s5, %s2355_s5 }
0x2ab5   :  { %p2950_p6 = scmp.ne.s32.totalorder %s2355_s5, %s2949_s18  ;;  %p2955_p8 = scmp.lt.s32.totalorder %s2949_s18, %s2949_s18 }
0x2ab7   :  { %p2956_p9 = por %p2955_p8, %p2954_p7 }
0x2ab9   :  { %p2957_p10 = pnand %p2956_p9, %p2950_p6 }
0x2b20   :  { %v2218_v39 = vpop.permute.xlu0 %2217 }
0x2b21   :  { %v2220_v25 = vmul.f32 %v2866_v19, %v2218_v39 }
0x2b23   :  { %2228 = vrot.lane.b32.xlu1 %v2220_v25, %s3020_s16 }
0x2b24   :  { %v1157_v26 = vpop.permute.xlu0 %1156 }
0x2b25   :  { %v1160_v27 = vsel %vm104_vm8, %v1157_v26, %v1134_v12 }
0x2b26   :  { %1171 = vst.msk [vmem:[#allocation14 - $0x6] sm:$0xc0] %vm685_vm7, %v1160_v27 }
0x2b27   :  { %2222 = vrot.lane.b32.xlu1 %v2214_v23, %s3030_s6 }
0x2b95   :  { %v2229_v2 = vpop.permute.xlu1 %2228 }
0x2b96   :  { %v2233_v29 = vsel %vm104_vm8, %v2229_v2, %v2231_v28  ;;  %v2234_v31 = vsel %vm104_vm8, %v2229_v2, 0.0 }
0x2b97   :  { %2235 = vst.msk [vmem:[#allocation2 + $0x8] sm:$0xc0] %vm685_vm7, %v2234_v31  ;;  %2237 = vst.msk [vmem:[#allocation12 - $0x4] sm:$0xc0] %vm685_vm7, %v2233_v29 }
0x2b99   :  { %v2223_v10 = vpop.permute.xlu1 %2222 }
0x2b9a   :  { %v2226_v12 = vsel %vm104_vm8, %v2223_v10, %v2200_v59 }
0x2b9b   :  { %2239 = vst.msk [vmem:[#allocation14 - $0x4] sm:$0xc0] %vm685_vm7, %v2226_v12 }
0x2b9e   :  { %v2241_v5 = vld [vmem:[#allocation2 + $0x8] sm:$0xff] }
0x2b9f   :  { %2724 = vmatmul.mubr.msk.f32.vlgmr.msra.gmra.mxu0 %vm203_vm2, %v2241_v5 }
0x2ba0   :  { %2960 = shalt.err (!%p2957_p10)
}
0x2ba1   :  { %2360 = dma.vmem_to_hbm [thread:$0]  %s2355_s5, 64, %s3679_s13, [#allocation13], %s3020_s16, %s3020_s16, %s3021_s17  }
0x2ba2   :  { %s3032_s19 = smov [#allocation14]  }
0x2ba3   :  { %s2366_s20 = sshll.u32 %s3032_s19, 4  ;;  %s2367_s20 = int_to_ptr.vmem [resolvable:$true] %s2366_s20 }
0x2ba4   :  { %s2969_s3 = scalar_lea.vmem %s2367_s20, 64  ;;  %p2974_p12 = scmp.lt.s32.totalorder %s2367_s20, %s2367_s20 }
0x2ba5   :  { %p2970_p11 = scmp.ne.s32.totalorder %s2367_s20, %s2969_s3  ;;  %p2975_p13 = scmp.lt.s32.totalorder %s2969_s3, %s2969_s3 }
0x2ba7   :  { %p2976_p0 = por %p2975_p13, %p2974_p12 }
0x2ba9   :  { %p2977_p1 = pnand %p2976_p0, %p2970_p11 }
0x2bab   :  { %2980 = shalt.err (!%p2977_p1)
}
0x2bac   :  { %2372 = dma.vmem_to_hbm [thread:$0]  %s2367_s20, 64, %s3680_s14, [#allocation13], %s3020_s16, %s3020_s16, %s3021_s17   ;;  %vm2334_vm9 = vcmask 162816  }
0x2bad   :  { %v2425_v18 = vld [vmem:[%s3677_s11] ss:$0 sm:$0xff]  ;;  %s3033_s13 = smov [#allocation11]  }
0x2bae   :  { %s2342_s26 = sshll.u32 %s3033_s13, 4  ;;  %s2343_s26 = int_to_ptr.vmem [resolvable:$true] %s2342_s26 }
0x2baf   :  { %s2989_s7 = scalar_lea.vmem %s2343_s26, 256  ;;  %p2994_p3 = scmp.lt.s32.totalorder %s2343_s26, %s2343_s26 }
0x2bb0   :  { %p2990_p2 = scmp.ne.s32.totalorder %s2343_s26, %s2989_s7  ;;  %p2995_p4 = scmp.lt.s32.totalorder %s2989_s7, %s2989_s7 }
0x2bb2   :  { %p2996_p5 = por %p2995_p4, %p2994_p3 }
0x2bb4   :  { %p2997_p6 = pnand %p2996_p5, %p2990_p2 }
0x2c5f   :  { %v2725_v32 = vpop.f32.mrf.mxu0 }
0x2c60   :  { %v2331_v11 = vadd.f32 %v2725_v32, %v2425_v18 }
0x2c61   :  { %v2325_v6 = vpop.f32.mrf.mxu0 }
0x2c62   :  { %v2326_v34 = vadd.f32 %v2425_v18, %v2325_v6  ;;  %2336 = vst.msk [vmem:[#allocation11 + $0x8] sm:$0xff] %vm2334_vm9, %v2331_v11 }
0x2c64   :  { %2335 = vst.msk [vmem:[#allocation11] sm:$0xff] %vm2334_vm9, %v2326_v34 }
0x2c65   :  { %3000 = shalt.err (!%p2997_p6)
}
0x2c66   :  { %2348 = dma.vmem_to_hbm [thread:$0]  %s2343_s26, 256, %s3678_s12, [#allocation5], %s3023_s23, %s3023_s23, %s3024_s24  }
0x2c67   :  { %3015 = dma.done.wait [#allocation5], 256  }
0x2c68   :  { %3016 = vsyncadd [#allocation5], 4294967040 }
0x2c69   :  { %3017 = dma.done.wait [#allocation13], 128  }
0x2c6a   :  { %3018 = vsyncadd [#allocation13], 4294967168 }
0x2c6b   :  { %2382 = vsyncpa [#allocation4], 1 }
0x2c6c   :  { %2383 = vsyncpa [#allocation7], 1 }
0x2c6d   :  { %2384 = vsyncpa [#allocation10], 1 }
0x2c6e   :  { %2385 = vsyncpa [#allocation5], 1 }
0x2c6f   :  { %2386 = vsyncpa [#allocation13], 1 }

</bundles_post_ra>
